<compile_context>
chip_gen: v5e
topology: v5e:2x2
jax: 0.10.0
libtpu: 0.0.40
codegen_flags: <defaults>
</compile_context>

<pallas_src>
import functools

import jax
import jax.numpy as jnp
from jax import lax
from jax.experimental import pallas as pl
from jax.experimental.pallas import tpu as pltpu

EXPANSION = 4
BN_EPS = 1e-3  # the PyTorch module explicitly uses eps=0.001


def bottleneck_kernel(x_ref, w1_ref, b1_ref, w2_ref, b2_ref, w3_ref, b3_ref,
                      out_ref, ypad_ref, *, width, hw, pad):
    cdt = w1_ref.dtype                      # compute (MXU operand) dtype
    cmid = ypad_ref.shape[1]

    x = x_ref[0]                            # (HW, Cin), compute dtype

    # ---- conv1 (1x1, BN1 scale folded into w1) + bias + ReLU ----
    y1 = jnp.dot(x, w1_ref[...], preferred_element_type=jnp.float32)
    y1 = jnp.maximum(y1 + b1_ref[...], 0.0)                   # (HW, Cmid) f32

    # ---- zero-padded y1 in VMEM scratch; only the pad strips are (re)zeroed
    #      each step (interior is fully overwritten by y1). ----
    strip = jnp.zeros((pad, cmid), jnp.float32)
    ypad_ref[pl.ds(0, pad), :] = strip
    ypad_ref[pl.ds(pad + hw, pad), :] = strip
    ypad_ref[pl.ds(pad, hw), :] = y1

    # ---- conv2 (3x3 'same', BN2 scale folded into w2) as ONE im2col matmul,
    #      K = 9*Cmid.  Vertical (dy) taps come from row-offset windows of the
    #      padded scratch (top/bottom handled by the zero strips); horizontal
    #      (dx) edges are zeroed with an iota column predicate. ----
    def taps(dx):
        return jnp.concatenate(
            [ypad_ref[pl.ds(pad + dy * width + dx, hw), :] for dy in (-1, 0, 1)],
            axis=-1)                                           # (HW, 3*Cmid)

    col = lax.broadcasted_iota(jnp.int32, (hw, 1), 0) % width  # column index per row
    a_l = jnp.where(col > 0, taps(-1), 0.0)                    # dx = -1: left edge zeroed
    a_c = taps(0)                                              # dx =  0
    a_r = jnp.where(col < width - 1, taps(1), 0.0)             # dx = +1: right edge zeroed
    a9 = jnp.concatenate([a_l, a_c, a_r], axis=-1).astype(cdt)  # (HW, 9*Cmid)

    y2 = jnp.dot(a9, w2_ref[...], preferred_element_type=jnp.float32)
    y2 = jnp.maximum(y2 + b2_ref[...], 0.0)                    # (HW, Cmid) f32

    # ---- conv3 (1x1, BN3 scale folded into w3) + bias + identity + ReLU ----
    y3 = jnp.dot(y2.astype(cdt), w3_ref[...], preferred_element_type=jnp.float32)
    y3 = y3 + b3_ref[...] + x.astype(jnp.float32)
    out_ref[0] = jnp.maximum(y3, 0.0).astype(out_ref.dtype)


def _fold_bn(gamma, beta, mean, var, eps=BN_EPS):
    scale = gamma / jnp.sqrt(var + eps)
    bias = beta - mean * scale
    return (scale.reshape(1, -1).astype(jnp.float32),
            bias.reshape(1, -1).astype(jnp.float32))


def bottleneck_forward(x_nchw, params, *, compute_dtype=jnp.bfloat16):
    """x_nchw: (N, Cin, H, W) f32 -> (N, Cin, H, W) f32. stride=1, no downsample."""
    n, cin, h, w = x_nchw.shape
    hw = h * w

    conv1_w = params["conv1_w"]      # (Cmid, Cin, 1, 1)
    conv2_w = params["conv2_w"]      # (Cmid, Cmid, 3, 3)
    conv3_w = params["conv3_w"]      # (Cout, Cmid, 1, 1)
    cmid = conv1_w.shape[0]
    cout = conv3_w.shape[0]
    assert cout == cin, "identity residual needs in_channels == expansion*out_channels"

    s1, b1 = _fold_bn(params["bn1_gamma"], params["bn1_beta"],
                      params["bn1_mean"], params["bn1_var"])
    s2, b2 = _fold_bn(params["bn2_gamma"], params["bn2_beta"],
                      params["bn2_mean"], params["bn2_var"])
    s3, b3 = _fold_bn(params["bn3_gamma"], params["bn3_beta"],
                      params["bn3_mean"], params["bn3_var"])

    # Fold BN scales into the conv weights (free here; commutes with the matmul).
    w1 = (jnp.transpose(conv1_w[:, :, 0, 0]) * s1).astype(compute_dtype)   # (Cin, Cmid)
    # im2col weight layout: rows ordered (dx outer, dy inner, Cin-mid innermost)
    # to match the kernel's concat order [dx=-1 | dx=0 | dx=+1], each = [dy=-1,0,+1].
    w2 = jnp.transpose(conv2_w, (3, 2, 1, 0)).reshape(9 * cmid, cmid)      # (9*Cmid, Cmid)
    w2 = (w2 * s2).astype(compute_dtype)
    w3 = (jnp.transpose(conv3_w[:, :, 0, 0]) * s3).astype(compute_dtype)   # (Cmid, Cout)

    # Channels-last rows; dot operands shipped in compute dtype (bf16 by default).
    x_rows = jnp.transpose(x_nchw, (0, 2, 3, 1)).reshape(n, hw, cin).astype(compute_dtype)

    # Pad strip: multiple of 8 sublanes and >= w + 1 so every tap window start
    # is in-bounds; with w a multiple of 8 the dy-offset windows stay aligned.
    pad = max(8, -((w + 1) // -8) * 8)

    full = lambda a: pl.BlockSpec(a.shape, lambda i: (0,) * a.ndim)

    out_rows = pl.pallas_call(
        functools.partial(bottleneck_kernel, width=w, hw=hw, pad=pad),
        out_shape=jax.ShapeDtypeStruct((n, hw, cout), jnp.float32),
        grid_spec=pltpu.PrefetchScalarGridSpec(
            num_scalar_prefetch=0,
            grid=(n,),
            in_specs=[
                pl.BlockSpec((1, hw, cin), lambda i: (i, 0, 0)),
                full(w1), full(b1),
                full(w2), full(b2),
                full(w3), full(b3),
            ],
            out_specs=pl.BlockSpec((1, hw, cout), lambda i: (i, 0, 0)),
            scratch_shapes=[
                pltpu.VMEM((hw + 2 * pad, cmid), jnp.float32),   # zero-padded y1
            ],
        ),
        compiler_params=pltpu.CompilerParams(
            dimension_semantics=("parallel",),
            vmem_limit_bytes=32 * 1024 * 1024,   # fits v7x's 64 MiB/TC with headroom
        ),
    )(x_rows, w1, b1, w2, b2, w3, b3)

    return jnp.transpose(out_rows.reshape(n, h, w, cout), (0, 3, 1, 2))


def init_params(key, in_channels, out_channels):
    """Deterministic synthetic parameters with PyTorch shapes (eval-mode BN)."""
    cmid = out_channels
    cout = out_channels * EXPANSION
    ks = jax.random.split(key, 15)
    nrm = lambda k, s: 0.1 * jax.random.normal(k, s, jnp.float32)
    pos = lambda k, s: jax.random.uniform(k, s, jnp.float32, 0.5, 1.5)
    return {
        "conv1_w": nrm(ks[0], (cmid, in_channels, 1, 1)),
        "bn1_gamma": pos(ks[1], (cmid,)), "bn1_beta": nrm(ks[2], (cmid,)),
        "bn1_mean": nrm(ks[3], (cmid,)), "bn1_var": pos(ks[4], (cmid,)),
        "conv2_w": nrm(ks[5], (cmid, cmid, 3, 3)),
        "bn2_gamma": pos(ks[6], (cmid,)), "bn2_beta": nrm(ks[7], (cmid,)),
        "bn2_mean": nrm(ks[8], (cmid,)), "bn2_var": pos(ks[9], (cmid,)),
        "conv3_w": nrm(ks[10], (cout, cmid, 1, 1)),
        "bn3_gamma": pos(ks[11], (cout,)), "bn3_beta": nrm(ks[12], (cout,)),
        "bn3_mean": nrm(ks[13], (cout,)), "bn3_var": pos(ks[14], (cout,)),
    }


def reference_forward(x, params):
    """Pure-JAX reference with PyTorch eval-mode semantics (for checking)."""
    dn = ("NCHW", "OIHW", "NCHW")

    def bn(y, g, b, m, v):
        sh = (1, -1, 1, 1)
        return ((y - m.reshape(sh)) * (g / jnp.sqrt(v + BN_EPS)).reshape(sh)
                + b.reshape(sh))

    identity = x
    y = lax.conv_general_dilated(x, params["conv1_w"], (1, 1), "VALID",
                                 dimension_numbers=dn)
    y = jax.nn.relu(bn(y, params["bn1_gamma"], params["bn1_beta"],
                       params["bn1_mean"], params["bn1_var"]))
    y = lax.conv_general_dilated(y, params["conv2_w"], (1, 1), "SAME",
                                 dimension_numbers=dn)
    y = jax.nn.relu(bn(y, params["bn2_gamma"], params["bn2_beta"],
                       params["bn2_mean"], params["bn2_var"]))
    y = lax.conv_general_dilated(y, params["conv3_w"], (1, 1), "VALID",
                                 dimension_numbers=dn)
    y = bn(y, params["bn3_gamma"], params["bn3_beta"],
           params["bn3_mean"], params["bn3_var"])
    return jax.nn.relu(y + identity)


if __name__ == "__main__":
    key = jax.random.PRNGKey(0)
    kx, kp = jax.random.split(key)

    N, H, W = 2, 16, 16
    out_channels = 4
    in_channels = out_channels * EXPANSION    # 16 -> identity residual, no downsample

    x = jax.random.normal(kx, (N, in_channels, H, W), jnp.float32)
    params = init_params(kp, in_channels, out_channels)
    ref = reference_forward(x, params)

    # Exact-precision path (validates the fused structure / im2col / masks).
    out_f32 = jax.block_until_ready(
        bottleneck_forward(x, params, compute_dtype=jnp.float32))
    assert out_f32.shape == x.shape
    err_f32 = float(jnp.max(jnp.abs(out_f32 - ref)))
    assert err_f32 < 1e-3, f"f32 max abs err {err_f32}"

    # Default bf16-MXU path: bf16 dot operands, f32 accumulation + epilogues.
    out_bf16 = jax.block_until_ready(bottleneck_forward(x, params))
    assert out_bf16.shape == x.shape
    err_bf16 = float(jnp.max(jnp.abs(out_bf16 - ref)))
    assert err_bf16 < 1e-1, f"bf16 max abs err {err_bf16}"

    print("KERNEL_OK")
</pallas_src>

<mosaic_0001>
module attributes {stable_mosaic.version = 11 : i64} {
  func.func @bottleneck_kernel(%arg0: i32, %arg1: memref<1x256x16xf32, #tpu.memory_space<vmem>>, %arg2: memref<16x4xf32, #tpu.memory_space<vmem>>, %arg3: memref<1x4xf32, #tpu.memory_space<vmem>>, %arg4: memref<36x4xf32, #tpu.memory_space<vmem>>, %arg5: memref<1x4xf32, #tpu.memory_space<vmem>>, %arg6: memref<4x16xf32, #tpu.memory_space<vmem>>, %arg7: memref<1x16xf32, #tpu.memory_space<vmem>>, %arg8: memref<1x256x16xf32, #tpu.memory_space<vmem>>, %arg9: memref<304x4xf32, #tpu.memory_space<vmem>>) attributes {dimension_semantics = [#tpu.dimension_semantics<parallel>], iteration_bounds = array<i64: 2>, scalar_prefetch = 0 : i64, scratch_operands = 1 : i64, tpu.core_type = #tpu.core_type<tc>, window_params = [{transform_indices = @transform_0, window_bounds = array<i64: 1, 256, 16>}, {pipeline_mode = #tpu.pipeline_mode<synchronous>, transform_indices = @transform_1, window_bounds = array<i64: 16, 4>}, {pipeline_mode = #tpu.pipeline_mode<synchronous>, transform_indices = @transform_2, window_bounds = array<i64: 1, 4>}, {pipeline_mode = #tpu.pipeline_mode<synchronous>, transform_indices = @transform_3, window_bounds = array<i64: 36, 4>}, {pipeline_mode = #tpu.pipeline_mode<synchronous>, transform_indices = @transform_4, window_bounds = array<i64: 1, 4>}, {pipeline_mode = #tpu.pipeline_mode<synchronous>, transform_indices = @transform_5, window_bounds = array<i64: 4, 16>}, {pipeline_mode = #tpu.pipeline_mode<synchronous>, transform_indices = @transform_6, window_bounds = array<i64: 1, 16>}, {transform_indices = @transform_7, window_bounds = array<i64: 1, 256, 16>}]} {
    %c0 = arith.constant 0 : index
    %c0_0 = arith.constant 0 : index
    %c0_1 = arith.constant 0 : index
    %0 = vector.load %arg1[%c0, %c0_0, %c0_1] : memref<1x256x16xf32, #tpu.memory_space<vmem>>, vector<1x256x16xf32>
    %1 = vector.shape_cast %0 : vector<1x256x16xf32> to vector<256x16xf32>
    %c0_2 = arith.constant 0 : index
    %c0_3 = arith.constant 0 : index
    %2 = vector.load %arg2[%c0_2, %c0_3] : memref<16x4xf32, #tpu.memory_space<vmem>>, vector<16x4xf32>
    %cst = arith.constant dense<0.000000e+00> : vector<256x4xf32>
    %3 = tpu.matmul %1, %2, %cst {dimension_numbers = #tpu.dot_dimension_numbers<[1], [0], [0], [1], [0, 0, 1, 1], [], []>} : vector<256x16xf32>, vector<16x4xf32>, vector<256x4xf32> -> vector<256x4xf32>
    %c0_4 = arith.constant 0 : index
    %c0_5 = arith.constant 0 : index
    %4 = vector.load %arg3[%c0_4, %c0_5] : memref<1x4xf32, #tpu.memory_space<vmem>>, vector<1x4xf32>
    %5 = vector.broadcast %4 : vector<1x4xf32> to vector<256x4xf32>
    %6 = arith.addf %3, %5 : vector<256x4xf32>
    %cst_6 = arith.constant 0.000000e+00 : f32
    %7 = vector.broadcast %cst_6 : f32 to vector<256x4xf32>
    %8 = arith.maximumf %6, %7 : vector<256x4xf32>
    %cst_7 = arith.constant 0.000000e+00 : f32
    %9 = vector.broadcast %cst_7 : f32 to vector<24x4xf32>
    %c0_8 = arith.constant 0 : index
    %c0_9 = arith.constant 0 : index
    %10 = vector.load %arg9[%c0_8, %c0_9] : memref<304x4xf32, #tpu.memory_space<vmem>>, vector<24x4xf32>
    tpu.vector_store %arg9[%c0_8, %c0_9], %9 {strides = array<i32>} : memref<304x4xf32, #tpu.memory_space<vmem>>, vector<24x4xf32>,
    %c280 = arith.constant 280 : index
    %c0_10 = arith.constant 0 : index
    %11 = vector.load %arg9[%c280, %c0_10] : memref<304x4xf32, #tpu.memory_space<vmem>>, vector<24x4xf32>
    tpu.vector_store %arg9[%c280, %c0_10], %9 {strides = array<i32>} : memref<304x4xf32, #tpu.memory_space<vmem>>, vector<24x4xf32>,
    %c24 = arith.constant 24 : index
    %c0_11 = arith.constant 0 : index
    %12 = vector.load %arg9[%c24, %c0_11] : memref<304x4xf32, #tpu.memory_space<vmem>>, vector<256x4xf32>
    tpu.vector_store %arg9[%c24, %c0_11], %8 {strides = array<i32>} : memref<304x4xf32, #tpu.memory_space<vmem>>, vector<256x4xf32>,
    %13 = tpu.iota {dimensions = array<i32: 0>} : vector<256x1xi32>
    %c16_i32 = arith.constant 16 : i32
    %c0_i32 = arith.constant 0 : i32
    %14 = arith.cmpi eq, %c16_i32, %c0_i32 : i32
    %c1_i32 = arith.constant 1 : i32
    %15 = arith.select %14, %c1_i32, %c16_i32 : i32
    %16 = vector.broadcast %15 : i32 to vector<256x1xi32>
    %17 = arith.remsi %13, %16 : vector<256x1xi32>
    %c0_i32_12 = arith.constant 0 : i32
    %18 = vector.broadcast %c0_i32_12 : i32 to vector<256x1xi32>
    %19 = arith.cmpi ne, %17, %18 : vector<256x1xi32>
    %c0_i32_13 = arith.constant 0 : i32
    %20 = vector.broadcast %c0_i32_13 : i32 to vector<256x1xi32>
    %21 = arith.cmpi slt, %17, %20 : vector<256x1xi32>
    %c0_i32_14 = arith.constant 0 : i32
    %22 = arith.cmpi slt, %15, %c0_i32_14 : i32
    %23 = vector.broadcast %22 : i1 to vector<256x1xi1>
    %24 = vector.broadcast %23 : vector<256x1xi1> to vector<256x1xi1>
    %25 = arith.xori %21, %24 : vector<256x1xi1>
    %26 = arith.andi %25, %19 : vector<256x1xi1>
    %27 = vector.broadcast %15 : i32 to vector<256x1xi32>
    %28 = arith.addi %17, %27 : vector<256x1xi32>
    %29 = arith.select %26, %28, %17 : vector<256x1xi1>, vector<256x1xi32>
    %c0_i32_15 = arith.constant 0 : i32
    %30 = vector.broadcast %c0_i32_15 : i32 to vector<256x1xi32>
    %31 = arith.cmpi sgt, %29, %30 : vector<256x1xi32>
    %c7 = arith.constant 7 : index
    %c0_16 = arith.constant 0 : index
    %32 = vector.load %arg9[%c7, %c0_16] : memref<304x4xf32, #tpu.memory_space<vmem>>, vector<256x4xf32>
    %c23 = arith.constant 23 : index
    %c0_17 = arith.constant 0 : index
    %33 = vector.load %arg9[%c23, %c0_17] : memref<304x4xf32, #tpu.memory_space<vmem>>, vector<256x4xf32>
    %c39 = arith.constant 39 : index
    %c0_18 = arith.constant 0 : index
    %34 = vector.load %arg9[%c39, %c0_18] : memref<304x4xf32, #tpu.memory_space<vmem>>, vector<256x4xf32>
    %35 = tpu.concatenate %32, %33, %34 in 1 : vector<256x4xf32>, vector<256x4xf32>, vector<256x4xf32> -> vector<256x12xf32>
    %cst_19 = arith.constant 0.000000e+00 : f32
    %36 = vector.shape_cast %31 : vector<256x1xi1> to vector<256x1xi1>
    %37 = vector.broadcast %36 : vector<256x1xi1> to vector<256x12xi1>
    %38 = vector.broadcast %cst_19 : f32 to vector<256x12xf32>
    %39 = arith.select %37, %35, %38 : vector<256x12xi1>, vector<256x12xf32>
    %c8 = arith.constant 8 : index
    %c0_20 = arith.constant 0 : index
    %40 = vector.load %arg9[%c8, %c0_20] : memref<304x4xf32, #tpu.memory_space<vmem>>, vector<256x4xf32>
    %c24_21 = arith.constant 24 : index
    %c0_22 = arith.constant 0 : index
    %41 = vector.load %arg9[%c24_21, %c0_22] : memref<304x4xf32, #tpu.memory_space<vmem>>, vector<256x4xf32>
    %c40 = arith.constant 40 : index
    %c0_23 = arith.constant 0 : index
    %42 = vector.load %arg9[%c40, %c0_23] : memref<304x4xf32, #tpu.memory_space<vmem>>, vector<256x4xf32>
    %43 = tpu.concatenate %40, %41, %42 in 1 : vector<256x4xf32>, vector<256x4xf32>, vector<256x4xf32> -> vector<256x12xf32>
    %c15_i32 = arith.constant 15 : i32
    %44 = vector.broadcast %c15_i32 : i32 to vector<256x1xi32>
    %45 = arith.cmpi slt, %29, %44 : vector<256x1xi32>
    %c9 = arith.constant 9 : index
    %c0_24 = arith.constant 0 : index
    %46 = vector.load %arg9[%c9, %c0_24] : memref<304x4xf32, #tpu.memory_space<vmem>>, vector<256x4xf32>
    %c25 = arith.constant 25 : index
    %c0_25 = arith.constant 0 : index
    %47 = vector.load %arg9[%c25, %c0_25] : memref<304x4xf32, #tpu.memory_space<vmem>>, vector<256x4xf32>
    %c41 = arith.constant 41 : index
    %c0_26 = arith.constant 0 : index
    %48 = vector.load %arg9[%c41, %c0_26] : memref<304x4xf32, #tpu.memory_space<vmem>>, vector<256x4xf32>
    %49 = tpu.concatenate %46, %47, %48 in 1 : vector<256x4xf32>, vector<256x4xf32>, vector<256x4xf32> -> vector<256x12xf32>
    %cst_27 = arith.constant 0.000000e+00 : f32
    %50 = vector.shape_cast %45 : vector<256x1xi1> to vector<256x1xi1>
    %51 = vector.broadcast %50 : vector<256x1xi1> to vector<256x12xi1>
    %52 = vector.broadcast %cst_27 : f32 to vector<256x12xf32>
    %53 = arith.select %51, %49, %52 : vector<256x12xi1>, vector<256x12xf32>
    %54 = tpu.concatenate %39, %43, %53 in 1 : vector<256x12xf32>, vector<256x12xf32>, vector<256x12xf32> -> vector<256x36xf32>
    %c0_28 = arith.constant 0 : index
    %c0_29 = arith.constant 0 : index
    %55 = vector.load %arg4[%c0_28, %c0_29] : memref<36x4xf32, #tpu.memory_space<vmem>>, vector<36x4xf32>
    %cst_30 = arith.constant dense<0.000000e+00> : vector<256x4xf32>
    %56 = tpu.matmul %54, %55, %cst_30 {dimension_numbers = #tpu.dot_dimension_numbers<[1], [0], [0], [1], [0, 0, 1, 1], [], []>} : vector<256x36xf32>, vector<36x4xf32>, vector<256x4xf32> -> vector<256x4xf32>
    %c0_31 = arith.constant 0 : index
    %c0_32 = arith.constant 0 : index
    %57 = vector.load %arg5[%c0_31, %c0_32] : memref<1x4xf32, #tpu.memory_space<vmem>>, vector<1x4xf32>
    %58 = vector.broadcast %57 : vector<1x4xf32> to vector<256x4xf32>
    %59 = arith.addf %56, %58 : vector<256x4xf32>
    %cst_33 = arith.constant 0.000000e+00 : f32
    %60 = vector.broadcast %cst_33 : f32 to vector<256x4xf32>
    %61 = arith.maximumf %59, %60 : vector<256x4xf32>
    %c0_34 = arith.constant 0 : index
    %c0_35 = arith.constant 0 : index
    %62 = vector.load %arg6[%c0_34, %c0_35] : memref<4x16xf32, #tpu.memory_space<vmem>>, vector<4x16xf32>
    %cst_36 = arith.constant dense<0.000000e+00> : vector<256x16xf32>
    %63 = tpu.matmul %61, %62, %cst_36 {dimension_numbers = #tpu.dot_dimension_numbers<[1], [0], [0], [1], [0, 0, 1, 1], [], []>} : vector<256x4xf32>, vector<4x16xf32>, vector<256x16xf32> -> vector<256x16xf32>
    %c0_37 = arith.constant 0 : index
    %c0_38 = arith.constant 0 : index
    %64 = vector.load %arg7[%c0_37, %c0_38] : memref<1x16xf32, #tpu.memory_space<vmem>>, vector<1x16xf32>
    %65 = vector.broadcast %64 : vector<1x16xf32> to vector<256x16xf32>
    %66 = arith.addf %63, %65 : vector<256x16xf32>
    %67 = arith.addf %66, %1 : vector<256x16xf32>
    %cst_39 = arith.constant 0.000000e+00 : f32
    %68 = vector.broadcast %cst_39 : f32 to vector<256x16xf32>
    %69 = arith.maximumf %67, %68 : vector<256x16xf32>
    %c0_40 = arith.constant 0 : index
    %c0_41 = arith.constant 0 : index
    %c0_42 = arith.constant 0 : index
    %70 = vector.load %arg8[%c0_40, %c0_41, %c0_42] : memref<1x256x16xf32, #tpu.memory_space<vmem>>, vector<1x256x16xf32>
    %71 = vector.shape_cast %70 : vector<1x256x16xf32> to vector<256x16xf32>
    %72 = vector.shape_cast %69 : vector<256x16xf32> to vector<1x256x16xf32>
    tpu.vector_store %arg8[%c0_40, %c0_41, %c0_42], %72 {strides = array<i32>} : memref<1x256x16xf32, #tpu.memory_space<vmem>>, vector<1x256x16xf32>,
    return
  }
  func.func @transform_0(%arg0: i32) -> (i32, i32, i32) {
    %c0_i32 = arith.constant 0 : i32
    %c0_i32_0 = arith.constant 0 : i32
    %c0_i32_1 = arith.constant 0 : i32
    return %arg0, %c0_i32, %c0_i32_0 : i32, i32, i32
  }
  func.func @transform_1(%arg0: i32) -> (i32, i32) {
    %c0_i32 = arith.constant 0 : i32
    %c0_i32_0 = arith.constant 0 : i32
    %c0_i32_1 = arith.constant 0 : i32
    return %c0_i32, %c0_i32_0 : i32, i32
  }
  func.func @transform_2(%arg0: i32) -> (i32, i32) {
    %c0_i32 = arith.constant 0 : i32
    %c0_i32_0 = arith.constant 0 : i32
    %c0_i32_1 = arith.constant 0 : i32
    return %c0_i32, %c0_i32_0 : i32, i32
  }
  func.func @transform_3(%arg0: i32) -> (i32, i32) {
    %c0_i32 = arith.constant 0 : i32
    %c0_i32_0 = arith.constant 0 : i32
    %c0_i32_1 = arith.constant 0 : i32
    return %c0_i32, %c0_i32_0 : i32, i32
  }
  func.func @transform_4(%arg0: i32) -> (i32, i32) {
    %c0_i32 = arith.constant 0 : i32
    %c0_i32_0 = arith.constant 0 : i32
    %c0_i32_1 = arith.constant 0 : i32
    return %c0_i32, %c0_i32_0 : i32, i32
  }
  func.func @transform_5(%arg0: i32) -> (i32, i32) {
    %c0_i32 = arith.constant 0 : i32
    %c0_i32_0 = arith.constant 0 : i32
    %c0_i32_1 = arith.constant 0 : i32
    return %c0_i32, %c0_i32_0 : i32, i32
  }
  func.func @transform_6(%arg0: i32) -> (i32, i32) {
    %c0_i32 = arith.constant 0 : i32
    %c0_i32_0 = arith.constant 0 : i32
    %c0_i32_1 = arith.constant 0 : i32
    return %c0_i32, %c0_i32_0 : i32, i32
  }
  func.func @transform_7(%arg0: i32) -> (i32, i32, i32) {
    %c0_i32 = arith.constant 0 : i32
    %c0_i32_0 = arith.constant 0 : i32
    %c0_i32_1 = arith.constant 0 : i32
    return %arg0, %c0_i32, %c0_i32_0 : i32, i32, i32
  }
}

</mosaic_0001>

<bundles_post_ra>
// kernel: tpu_custom_call.1
= control target key start
LH: loop header
LB: loop body
LE: loop exit
PB: predicated region body
PF: predicated region fallthrough
CT: control target
= control target key end

     0   :  { %s3442_s24 = smov 0   ;;  %s5144_s0 = inlined_call_operand.vmem [shape: f32[2,256,16], index: 0, kind: input, shape index: {}]   ;;  %s5145_s1 = inlined_call_operand.vmem [shape: f32[16,4], index: 1, kind: input, shape index: {}]   ;;  %s5146_s2 = inlined_call_operand.vmem [shape: f32[1,4], index: 2, kind: input, shape index: {}]   ;;  %s5147_s3 = inlined_call_operand.vmem [shape: f32[36,4], index: 3, kind: input, shape index: {}]   ;;  %s5148_s4 = inlined_call_operand.vmem [shape: f32[1,4], index: 4, kind: input, shape index: {}]   ;;  %s5149_s5 = inlined_call_operand.vmem [shape: f32[4,16], index: 5, kind: input, shape index: {}]   ;;  %s5150_s6 = inlined_call_operand.vmem [shape: f32[1,16], index: 6, kind: input, shape index: {}]   ;;  %s5151_s7 = inlined_call_operand.vmem [shape: f32[2,256,16], index: 7, kind: output, shape index: {}]  }
   0x1 LB: > { %s3195_s25 = sadd.s32 4294967295, %s3395_s24   ;;  %p3199_p0 = scmp.ge.s32.totalorder %s3395_s24, 1  ;;  %s3395_s24 = sphi %s3442_s24, %s17_s24  }
   0x2   : > { %p237_p1 = scmp.lt.s32.totalorder %s3395_s24, 3 }
   0x4   : > { %p238_p2 = pnand %p3199_p0, %p237_p1 }
   0x6   : > { %241 = sbr.rel (%p238_p2) target bundleno = 1283 (0x503), region = 48 }
   0xb   : > { %v312_v0 = vld [vmem:[%s5145_s1 + $0x8] sm:$0xff]  ;;  %v311_v1 = vld [vmem:[%s5145_s1] sm:$0xff]  ;;  %p269_p3 = scmp.lt.s32.totalorder %s3195_s25, 1  ;;  %vm317_vm0 = vcmask 130048   ;;  %vm559_vm1 = vcmask 31744   ;;  %v3397_v21 = vmov 0.0  }
   0xc   : > { %428 = vmatpush.msra.mxu0 %v312_v0  ;;  %3306 = vmatpush.msra.mxu3 %v312_v0  ;;  %563 = vst.msk [vmem:[#allocation2 + $0x118] sm:$0xff] %vm559_vm1, %v3397_v21  ;;  %s3398_s11 = smov 8   ;;  %v3522_v27 = vld [vmem:[%s5146_s2] ss:$0 sm:$0xff]  ;;  %s3399_s14 = smov 4   ;;  %vm1341_vm2 = vcmask 64512  }
   0xd   : > { %s5266_s25 = smov (!%p269_p3, %s3195_s25), 1  ;;  %564 = vst.msk [vmem:[#allocation2 + $0x120] sm:$0xff] %vm559_vm1, %v3397_v21  ;;  %s3400_s15 = smov 12   ;;  %vm2678_vm6 = vcmask 1043456   ;;  %vm2539_vm9 = vcmask 195584   ;;  %vm2506_vm10 = vcmask 97280  }
   0xe   : > { %429 = vmatpush.msra.mxu0 %v311_v1  ;;  %3307 = vmatpush.msra.mxu3 %v311_v1  ;;  %s3304_s30 = sshll.u32 %s5266_s25, 8  ;;  %560 = vst.msk [vmem:[#allocation2] sm:$0xff] %vm559_vm1, %v3397_v21  ;;  %s3401_s16 = smov 24   ;;  %vm2581_vm11 = vcmask 293888  }
   0xf   : > { %s3464_s10 = scalar_lea.vmem %s5144_s0, %s3304_s30  ;;  %561 = vst.msk [vmem:[#allocation2 + $0x8] sm:$0xff] %vm559_vm1, %v3397_v21  ;;  %s4768_s19 = scalar_lea.vmem %s5151_s7, %s3304_s30 }
  0x10   : > { %v279_v2 = vld [vmem:[%s3464_s10] sm:$0xff]  ;;  %v304_v3 = vld [vmem:[%s3464_s10 + $0xc8] sm:$0xff]  ;;  %v305_v5 = vld [vmem:[%s3464_s10 + $0xd0] sm:$0xff]  ;;  %562 = vst.msk [vmem:[#allocation2 + $0x10] sm:$0xff] %vm559_vm1, %v3397_v21 }
  0x11   : > { %3204 = vmatmul.msk.f32.vlgmr.msra.gmra.mxu0 %vm317_vm0, %v279_v2  ;;  %3229 = vmatmul.msk.f32.vlgmr.msra.gmra.mxu3 %vm317_vm0, %v304_v3  ;;  %v280_v4 = vld [vmem:[%s3464_s10 + $0x8] sm:$0xff]  ;;  %v281_v6 = vld [vmem:[%s3464_s10 + $0x10] sm:$0xff]  ;;  %v306_v7 = vld [vmem:[%s3464_s10 + $0xd8] sm:$0xff]  ;;  %565 = vst.msk [vmem:[#allocation2 + $0x128] sm:$0xff] %vm559_vm1, %v3397_v21 }
  0x12   : > { %v282_v8 = vld [vmem:[%s3464_s10 + $0x18] sm:$0xff]  ;;  %v307_v9 = vld [vmem:[%s3464_s10 + $0xe0] sm:$0xff]  ;;  %v308_v11 = vld [vmem:[%s3464_s10 + $0xe8] sm:$0xff] }
  0x13   : > { %v283_v10 = vld [vmem:[%s3464_s10 + $0x20] sm:$0xff]  ;;  %v284_v12 = vld [vmem:[%s3464_s10 + $0x28] sm:$0xff]  ;;  %v309_v13 = vld [vmem:[%s3464_s10 + $0xf0] sm:$0xff] }
  0x14   : > { %v285_v14 = vld [vmem:[%s3464_s10 + $0x30] sm:$0xff]  ;;  %v286_v15 = vld [vmem:[%s3464_s10 + $0x38] sm:$0xff]  ;;  %v287_v16 = vld [vmem:[%s3464_s10 + $0x40] sm:$0xff] }
  0x15   : > { %v310_v17 = vld [vmem:[%s3464_s10 + $0xf8] sm:$0xff]  ;;  %v288_v18 = vld [vmem:[%s3464_s10 + $0x48] sm:$0xff]  ;;  %v289_v19 = vld [vmem:[%s3464_s10 + $0x50] sm:$0xff] }
  0x16   : > { %v290_v20 = vld [vmem:[%s3464_s10 + $0x58] sm:$0xff]  ;;  %v291_v22 = vld [vmem:[%s3464_s10 + $0x60] sm:$0xff]  ;;  %v292_v24 = vld [vmem:[%s3464_s10 + $0x68] sm:$0xff] }
  0x17   : > { %v1082_v23 = vld [vmem:[#allocation2 + $0x11f] sm:$0xff]  ;;  %v293_v25 = vld [vmem:[%s3464_s10 + $0x70] sm:$0xff]  ;;  %v296_v35 = vld [vmem:[%s3464_s10 + $0x88] sm:$0xff] }
  0x18   : > { %1275 = vrot.lane.b32.xlu0 %v1082_v23, %s3398_s11  ;;  %v294_v26 = vld [vmem:[%s3464_s10 + $0x78] sm:$0xff]  ;;  %v295_v29 = vld [vmem:[%s3464_s10 + $0x80] sm:$0xff]  ;;  %v297_v44 = vld [vmem:[%s3464_s10 + $0x90] sm:$0xff] }
  0x19   : > { %3205 = vmatmul.msk.f32.gmra.mxu0 %vm317_vm0, %v280_v4  ;;  %3230 = vmatmul.msk.f32.gmra.mxu3 %vm317_vm0, %v305_v5  ;;  %v298_v53 = vld [vmem:[%s3464_s10 + $0x98] sm:$0xff]  ;;  %v299_v63 = vld [vmem:[%s3464_s10 + $0xa0] sm:$0xff] }
  0x21   : > { %3206 = vmatmul.msk.f32.gmra.mxu0 %vm317_vm0, %v281_v6  ;;  %3231 = vmatmul.msk.f32.gmra.mxu3 %vm317_vm0, %v306_v7 }
  0x29   : > { %3207 = vmatmul.msk.f32.gmra.mxu0 %vm317_vm0, %v282_v8  ;;  %3232 = vmatmul.msk.f32.gmra.mxu3 %vm317_vm0, %v307_v9  ;;  %v300_v8 = vld [vmem:[%s3464_s10 + $0xa8] sm:$0xff] }
  0x31   : > { %3208 = vmatmul.msk.f32.gmra.mxu0 %vm317_vm0, %v283_v10  ;;  %3233 = vmatmul.msk.f32.gmra.mxu3 %vm317_vm0, %v308_v11 }
  0x39   : > { %3209 = vmatmul.msk.f32.gmra.mxu0 %vm317_vm0, %v284_v12  ;;  %3234 = vmatmul.msk.f32.gmra.mxu3 %vm317_vm0, %v309_v13 }
  0x41   : > { %3210 = vmatmul.msk.f32.gmra.mxu0 %vm317_vm0, %v285_v14  ;;  %3235 = vmatmul.msk.f32.gmra.mxu3 %vm317_vm0, %v310_v17  ;;  %v301_v14 = vld [vmem:[%s3464_s10 + $0xb0] sm:$0xff] }
  0x49   : > { %3211 = vmatmul.msk.f32.gmra.mxu0 %vm317_vm0, %v286_v15 }
  0x51   : > { %3212 = vmatmul.msk.f32.gmra.mxu0 %vm317_vm0, %v287_v16 }
  0x59   : > { %3213 = vmatmul.msk.f32.gmra.mxu0 %vm317_vm0, %v288_v18 }
  0x61   : > { %3214 = vmatmul.msk.f32.gmra.mxu0 %vm317_vm0, %v289_v19 }
  0x69   : > { %3215 = vmatmul.msk.f32.gmra.mxu0 %vm317_vm0, %v290_v20 }
  0x71   : > { %3216 = vmatmul.msk.f32.gmra.mxu0 %vm317_vm0, %v291_v22  ;;  %v302_v22 = vld [vmem:[%s3464_s10 + $0xb8] sm:$0xff] }
  0x79   : > { %3217 = vmatmul.msk.f32.gmra.mxu0 %vm317_vm0, %v292_v24 }
  0x81   : > { %3218 = vmatmul.msk.f32.gmra.mxu0 %vm317_vm0, %v293_v25 }
  0x89   : > { %3219 = vmatmul.msk.f32.gmra.mxu0 %vm317_vm0, %v294_v26 }
  0x8e   : > { %v431_v28 = vpop.f32.mrf.mxu0 }
  0x8f   : > { %v432_v30 = vadd.f32 %v3522_v27, %v431_v28 }
  0x91   : > { %v527_v31 = vmax.f32 %v432_v30, 0.0  ;;  %3220 = vmatmul.msk.f32.gmra.mxu0 %vm317_vm0, %v295_v29  ;;  %v303_v29 = vld [vmem:[%s3464_s10 + $0xc0] sm:$0xff] }
  0x93   : > { %566 = vst.msk [vmem:[#allocation2 + $0x18] sm:$0xff] %vm559_vm1, %v527_v31 }
  0x94   : > { %v506_v32 = vpop.f32.mrf.mxu3 }
  0x95   : > { %v507_v33 = vadd.f32 %v3522_v27, %v506_v32 }
  0x96   : > { %v434_v34 = vpop.f32.mrf.mxu0 }
  0x97   : > { %v435_v36 = vadd.f32 %v3522_v27, %v434_v34  ;;  %v552_v37 = vmax.f32 %v507_v33, 0.0 }
  0x99   : > { %v528_v38 = vmax.f32 %v435_v36, 0.0  ;;  %591 = vst.msk [vmem:[#allocation2 + $0xe0] sm:$0xff] %vm559_vm1, %v552_v37  ;;  %3221 = vmatmul.msk.f32.gmra.mxu0 %vm317_vm0, %v296_v35 }
  0x9a   : > { %v3533_v39 = vld [vmem:[#allocation2 + $0x18] sm:$0xff] }
  0x9b   : > { %v1049_v40 = vld [vmem:[#allocation2 + $0x17] sm:$0xff]  ;;  %567 = vst.msk [vmem:[#allocation2 + $0x20] sm:$0xff] %vm559_vm1, %v528_v38  ;;  %1538 = vrot.lane.b32.xlu1 %v3533_v39, %s3399_s14 }
  0x9c   : > { %1115 = vrot.lane.b32.xlu0 %v1049_v40, %s3399_s14  ;;  %v509_v41 = vpop.f32.mrf.mxu3 }
  0x9d   : > { %v510_v42 = vadd.f32 %v3522_v27, %v509_v41 }
  0x9e   : > { %v437_v43 = vpop.f32.mrf.mxu0 }
  0x9f   : > { %v438_v45 = vadd.f32 %v3522_v27, %v437_v43  ;;  %v553_v46 = vmax.f32 %v510_v42, 0.0 }
  0xa1   : > { %v529_v47 = vmax.f32 %v438_v45, 0.0  ;;  %592 = vst.msk [vmem:[#allocation2 + $0xe8] sm:$0xff] %vm559_vm1, %v553_v46  ;;  %3222 = vmatmul.msk.f32.gmra.mxu0 %vm317_vm0, %v297_v44 }
  0xa2   : > { %v3544_v48 = vld [vmem:[#allocation2 + $0x20] sm:$0xff] }
  0xa3   : > { %v1050_v49 = vld [vmem:[#allocation2 + $0x1f] sm:$0xff]  ;;  %568 = vst.msk [vmem:[#allocation2 + $0x28] sm:$0xff] %vm559_vm1, %v529_v47  ;;  %1540 = vrot.lane.b32.xlu2 %v3544_v48, %s3399_s14 }
  0xa4   : > { %1117 = vrot.lane.b32.xlu0 %v1050_v49, %s3399_s14  ;;  %v512_v50 = vpop.f32.mrf.mxu3  ;;  %v3555_v57 = vld [vmem:[#allocation2 + $0x19] sm:$0xff] }
  0xa5   : > { %v513_v51 = vadd.f32 %v3522_v27, %v512_v50 }
  0xa6   : > { %v440_v52 = vpop.f32.mrf.mxu0 }
  0xa7   : > { %v441_v54 = vadd.f32 %v3522_v27, %v440_v52  ;;  %v554_v55 = vmax.f32 %v513_v51, 0.0 }
  0xa8   : > { %v1075_v2 = vld [vmem:[#allocation2 + $0xe7] sm:$0xff] }
  0xa9   : > { %v530_v56 = vmax.f32 %v441_v54, 0.0  ;;  %593 = vst.msk [vmem:[#allocation2 + $0xf0] sm:$0xff] %vm559_vm1, %v554_v55  ;;  %3223 = vmatmul.msk.f32.gmra.mxu0 %vm317_vm0, %v298_v53 }
  0xaa   : > { %v1051_v58 = vld [vmem:[#allocation2 + $0x27] sm:$0xff] }
  0xab   : > { %v3557_v59 = vld [vmem:[#allocation2 + $0x28] sm:$0xff]  ;;  %569 = vst.msk [vmem:[#allocation2 + $0x30] sm:$0xff] %vm559_vm1, %v530_v56  ;;  %1896 = vrot.lane.b32.xlu2 %v3555_v57, %s3399_s14  ;;  %1119 = vrot.lane.b32.xlu1 %v1051_v58, %s3399_s14 }
  0xac   : > { %1542 = vrot.lane.b32.xlu0 %v3557_v59, %s3399_s14  ;;  %v515_v60 = vpop.f32.mrf.mxu3  ;;  %v3580_v12 = vld [vmem:[#allocation2 + $0x21] sm:$0xff] }
  0xad   : > { %v516_v61 = vadd.f32 %v3522_v27, %v515_v60 }
  0xae   : > { %v443_v62 = vpop.f32.mrf.mxu0 }
  0xaf   : > { %v444_v0 = vadd.f32 %v3522_v27, %v443_v62  ;;  %v555_v1 = vmax.f32 %v516_v61, 0.0 }
  0xb0   : > { %v1076_v4 = vld [vmem:[#allocation2 + $0xef] sm:$0xff] }
  0xb1   : > { %v531_v3 = vmax.f32 %v444_v0, 0.0  ;;  %3224 = vmatmul.msk.f32.gmra.mxu0 %vm317_vm0, %v299_v63  ;;  %594 = vst.msk [vmem:[#allocation2 + $0xf8] sm:$0xff] %vm559_vm1, %v555_v1 }
  0xb2   : > { %v1052_v19 = vld [vmem:[#allocation2 + $0x2f] sm:$0xff] }
  0xb3   : > { %570 = vst.msk [vmem:[#allocation2 + $0x38] sm:$0xff] %vm559_vm1, %v531_v3  ;;  %1167 = vrot.lane.b32.xlu2 %v1075_v2, %s3399_s14  ;;  %1636 = vrot.lane.b32.xlu1 %v3557_v59, %s3398_s11  ;;  %v3599_v25 = vld [vmem:[#allocation2 + $0x30] sm:$0xff] }
  0xb4   : > { %1169 = vrot.lane.b32.xlu0 %v1076_v4, %s3399_s14  ;;  %v518_v5 = vpop.f32.mrf.mxu3  ;;  %v3606_v26 = vld [vmem:[#allocation2 + $0x29] sm:$0xff] }
  0xb5   : > { %v519_v6 = vadd.f32 %v3522_v27, %v518_v5  ;;  %v3670_v5 = vpop.permute.xlu0 %1275 }
  0xb6   : > { %v446_v7 = vpop.f32.mrf.mxu0  ;;  %5163 = vst [vmem:[#allocation3_spill] sm:$0xff] %v3670_v5 }
  0xb7   : > { %v447_v9 = vadd.f32 %v3522_v27, %v446_v7  ;;  %v556_v10 = vmax.f32 %v519_v6, 0.0 }
  0xb8   : > { %v1077_v32 = vld [vmem:[#allocation2 + $0xf7] sm:$0xff] }
  0xb9   : > { %v532_v11 = vmax.f32 %v447_v9, 0.0  ;;  %3225 = vmatmul.msk.f32.gmra.mxu0 %vm317_vm0, %v300_v8  ;;  %595 = vst.msk [vmem:[#allocation2 + $0x100] sm:$0xff] %vm559_vm1, %v556_v10 }
  0xba   : > { %v3617_v33 = vld [vmem:[#allocation2 + $0x31] sm:$0xff] }
  0xbb   : > { %571 = vst.msk [vmem:[#allocation2 + $0x40] sm:$0xff] %vm559_vm1, %v532_v11  ;;  %1261 = vrot.lane.b32.xlu2 %v1075_v2, %s3398_s11  ;;  %1898 = vrot.lane.b32.xlu1 %v3580_v12, %s3399_s14  ;;  %v1053_v42 = vld [vmem:[#allocation2 + $0x37] sm:$0xff] }
  0xbc   : > { %1263 = vrot.lane.b32.xlu0 %v1076_v4, %s3398_s11  ;;  %v521_v16 = vpop.f32.mrf.mxu3  ;;  %v3632_v45 = vld [vmem:[#allocation2 + $0x38] sm:$0xff] }
  0xbd   : > { %v522_v17 = vadd.f32 %v3522_v27, %v521_v16 }
  0xbe   : > { %v449_v13 = vpop.f32.mrf.mxu0 }
  0xbf   : > { %v450_v15 = vadd.f32 %v3522_v27, %v449_v13  ;;  %v557_v20 = vmax.f32 %v522_v17, 0.0 }
  0xc0   : > { %v1078_v53 = vld [vmem:[#allocation2 + $0xff] sm:$0xff] }
  0xc1   : > { %v533_v18 = vmax.f32 %v450_v15, 0.0  ;;  %3226 = vmatmul.msk.f32.gmra.mxu0 %vm317_vm0, %v301_v14  ;;  %596 = vst.msk [vmem:[#allocation2 + $0x108] sm:$0xff] %vm559_vm1, %v557_v20 }
  0xc2   : > { %v3623_v41 = vld [vmem:[#allocation2 + $0x40] sm:$0xff] }
  0xc3   : > { %572 = vst.msk [vmem:[#allocation2 + $0x48] sm:$0xff] %vm559_vm1, %v533_v18  ;;  %1213 = vrot.lane.b32.xlu2 %v1051_v58, %s3398_s11  ;;  %1121 = vrot.lane.b32.xlu1 %v1052_v19, %s3399_s14  ;;  %v3634_v47 = vld [vmem:[#allocation2 + $0x39] sm:$0xff] }
  0xc4   : > { %1215 = vrot.lane.b32.xlu0 %v1052_v19, %s3398_s11  ;;  %v524_v34 = vpop.f32.mrf.mxu3  ;;  %v1054_v63 = vld [vmem:[#allocation2 + $0x3f] sm:$0xff] }
  0xc5   : > { %v525_v36 = vadd.f32 %v3522_v27, %v524_v34 }
  0xc6   : > { %v452_v21 = vpop.f32.mrf.mxu0 }
  0xc7   : > { %v453_v23 = vadd.f32 %v3522_v27, %v452_v21  ;;  %v558_v38 = vmax.f32 %v525_v36, 0.0 }
  0xc8   : > { %v1079_v52 = vld [vmem:[#allocation2 + $0x107] sm:$0xff] }
  0xc9   : > { %v534_v24 = vmax.f32 %v453_v23, 0.0  ;;  %3227 = vmatmul.msk.f32.gmra.mxu0 %vm317_vm0, %v302_v22  ;;  %597 = vst.msk [vmem:[#allocation2 + $0x110] sm:$0xff] %vm559_vm1, %v558_v38 }
  0xca   : > { %v3655_v61 = vld [vmem:[#allocation2 + $0x48] sm:$0xff] }
  0xcb   : > { %573 = vst.msk [vmem:[#allocation2 + $0x50] sm:$0xff] %vm559_vm1, %v534_v24  ;;  %1638 = vrot.lane.b32.xlu2 %v3599_v25, %s3398_s11  ;;  %1544 = vrot.lane.b32.xlu1 %v3599_v25, %s3399_s14  ;;  %v1055_v0 = vld [vmem:[#allocation2 + $0x47] sm:$0xff] }
  0xcc   : > { %1994 = vrot.lane.b32.xlu0 %v3606_v26, %s3398_s11  ;;  %v3675_v10 = vld [vmem:[#allocation2 + $0x41] sm:$0xff] }
  0xce   : > { %v455_v28 = vpop.f32.mrf.mxu0 }
  0xcf   : > { %v456_v30 = vadd.f32 %v3522_v27, %v455_v28 }
  0xd0   : > { %v1080_v17 = vld [vmem:[#allocation2 + $0x10f] sm:$0xff] }
  0xd1   : > { %v535_v31 = vmax.f32 %v456_v30, 0.0  ;;  %3228 = vmatmul.msk.f32.gmra.mxu0 %vm317_vm0, %v303_v29  ;;  %v1081_v29 = vld [vmem:[#allocation2 + $0x117] sm:$0xff] }
  0xd2   : > { %v3693_v18 = vld [vmem:[#allocation2 + $0x49] sm:$0xff] }
  0xd3   : > { %574 = vst.msk [vmem:[#allocation2 + $0x58] sm:$0xff] %vm559_vm1, %v535_v31  ;;  %1900 = vrot.lane.b32.xlu2 %v3606_v26, %s3399_s14  ;;  %1171 = vrot.lane.b32.xlu1 %v1077_v32, %s3399_s14  ;;  %v3718_v36 = vld [vmem:[#allocation2 + $0x50] sm:$0xff] }
  0xd4   : > { %1996 = vrot.lane.b32.xlu0 %v3617_v33, %s3398_s11 }
  0xd6   : > { %v458_v35 = vpop.f32.mrf.mxu0 }
  0xd7   : > { %v459_v37 = vadd.f32 %v3522_v27, %v458_v35 }
  0xd9   : > { %v536_v40 = vmax.f32 %v459_v37, 0.0 }
  0xda   : > { %v3704_v28 = vld [vmem:[#allocation2 + $0x58] sm:$0xff] }
  0xdb   : > { %575 = vst.msk [vmem:[#allocation2 + $0x60] sm:$0xff] %vm559_vm1, %v536_v40  ;;  %1123 = vrot.lane.b32.xlu2 %v1053_v42, %s3399_s14  ;;  %1265 = vrot.lane.b32.xlu1 %v1077_v32, %s3398_s11  ;;  %v3720_v38 = vld [vmem:[#allocation2 + $0x51] sm:$0xff] }
  0xdc   : > { %1548 = vrot.lane.b32.xlu0 %v3623_v41, %s3399_s14  ;;  %5166 = vst [vmem:[#allocation6_spill] sm:$0xff] %v3704_v28  ;;  %v1056_v40 = vld [vmem:[#allocation2 + $0x4f] sm:$0xff] }
  0xde   : > { %v461_v43 = vpop.f32.mrf.mxu0 }
  0xdf   : > { %v462_v44 = vadd.f32 %v3522_v27, %v461_v43 }
  0xe1   : > { %v537_v46 = vmax.f32 %v462_v44, 0.0 }
  0xe3   : > { %576 = vst.msk [vmem:[#allocation2 + $0x68] sm:$0xff] %vm559_vm1, %v537_v46  ;;  %1546 = vrot.lane.b32.xlu2 %v3632_v45, %s3399_s14  ;;  %1217 = vrot.lane.b32.xlu1 %v1053_v42, %s3398_s11 }
  0xe4   : > { %1998 = vrot.lane.b32.xlu0 %v3634_v47, %s3398_s11 }
  0xe6   : > { %v464_v49 = vpop.f32.mrf.mxu0 }
  0xe7   : > { %v465_v50 = vadd.f32 %v3522_v27, %v464_v49 }
  0xe9   : > { %v538_v51 = vmax.f32 %v465_v50, 0.0 }
  0xeb   : > { %577 = vst.msk [vmem:[#allocation2 + $0x70] sm:$0xff] %vm559_vm1, %v538_v51  ;;  %1173 = vrot.lane.b32.xlu2 %v1078_v53, %s3399_s14  ;;  %1640 = vrot.lane.b32.xlu1 %v3632_v45, %s3398_s11 }
  0xec   : > { %1175 = vrot.lane.b32.xlu0 %v1079_v52, %s3399_s14 }
  0xee   : > { %v467_v54 = vpop.f32.mrf.mxu0 }
  0xef   : > { %v468_v55 = vadd.f32 %v3522_v27, %v467_v54 }
  0xf1   : > { %v539_v56 = vmax.f32 %v468_v55, 0.0 }
  0xf3   : > { %578 = vst.msk [vmem:[#allocation2 + $0x78] sm:$0xff] %vm559_vm1, %v539_v56  ;;  %1267 = vrot.lane.b32.xlu2 %v1078_v53, %s3398_s11  ;;  %1902 = vrot.lane.b32.xlu1 %v3617_v33, %s3399_s14 }
  0xf4   : > { %1269 = vrot.lane.b32.xlu0 %v1079_v52, %s3398_s11 }
  0xf6   : > { %v470_v58 = vpop.f32.mrf.mxu0 }
  0xf7   : > { %v471_v60 = vadd.f32 %v3522_v27, %v470_v58  ;;  %v1058_v58 = vld [vmem:[#allocation2 + $0x5f] sm:$0xff] }
  0xf9   : > { %v540_v62 = vmax.f32 %v471_v60, 0.0  ;;  %v1057_v60 = vld [vmem:[#allocation2 + $0x57] sm:$0xff] }
  0xfb   : > { %579 = vst.msk [vmem:[#allocation2 + $0x80] sm:$0xff] %vm559_vm1, %v540_v62  ;;  %1125 = vrot.lane.b32.xlu2 %v1054_v63, %s3399_s14  ;;  %1550 = vrot.lane.b32.xlu1 %v3655_v61, %s3399_s14 }
  0xfc   : > { %1127 = vrot.lane.b32.xlu0 %v1055_v0, %s3399_s14 }
  0xfd   : > { %v3662_v1 = vpop.permute.xlu2 %1540 }
  0xfe   : > { %v473_v2 = vpop.f32.mrf.mxu0 }
  0xff   : > { %v474_v3 = vadd.f32 %v3522_v27, %v473_v2 }
 0x101   : > { %v541_v4 = vmax.f32 %v474_v3, 0.0 }
 0x103   : > { %580 = vst.msk [vmem:[#allocation2 + $0x88] sm:$0xff] %vm559_vm1, %v541_v4  ;;  %1219 = vrot.lane.b32.xlu2 %v1054_v63, %s3398_s11  ;;  %1644 = vrot.lane.b32.xlu1 %v3655_v61, %s3398_s11  ;;  %v3760_v4 = vld [vmem:[#allocation2 + $0x60] sm:$0xff] }
 0x104   : > { %1221 = vrot.lane.b32.xlu0 %v1055_v0, %s3398_s11  ;;  %5173 = vst [vmem:[#allocation13_spill] sm:$0xff] %v3760_v4 }
 0x105   : > { %v3672_v6 = vpop.permute.xlu2 %1896 }
 0x106   : > { %v476_v7 = vpop.f32.mrf.mxu0 }
 0x107   : > { %v477_v8 = vadd.f32 %v3522_v27, %v476_v7 }
 0x109   : > { %v542_v9 = vmax.f32 %v477_v8, 0.0 }
 0x10b   : > { %581 = vst.msk [vmem:[#allocation2 + $0x90] sm:$0xff] %vm559_vm1, %v542_v9  ;;  %1642 = vrot.lane.b32.xlu2 %v3623_v41, %s3398_s11  ;;  %1906 = vrot.lane.b32.xlu1 %v3675_v10, %s3399_s14 }
 0x10c   : > { %2000 = vrot.lane.b32.xlu0 %v3675_v10, %s3398_s11 }
 0x10d   : > { %v3684_v11 = vpop.permute.xlu2 %1167  ;;  %v3697_v19 = vpop.permute.xlu1 %1538 }
 0x10e   : > { %5164 = vst [vmem:[#allocation4_spill] sm:$0xff] %v3684_v11  ;;  %v3686_v13 = vpop.permute.xlu0 %1115  ;;  %v479_v14 = vpop.f32.mrf.mxu0 }
 0x10f   : > { %v480_v15 = vadd.f32 %v3522_v27, %v479_v14 }
 0x111   : > { %v543_v16 = vmax.f32 %v480_v15, 0.0 }
 0x113   : > { %582 = vst.msk [vmem:[#allocation2 + $0x98] sm:$0xff] %vm559_vm1, %v543_v16  ;;  %1904 = vrot.lane.b32.xlu2 %v3634_v47, %s3399_s14  ;;  %1177 = vrot.lane.b32.xlu1 %v1080_v17, %s3399_s14 }
 0x114   : > { %2002 = vrot.lane.b32.xlu0 %v3693_v18, %s3398_s11 }
 0x115   : > { %v3699_v20 = vpop.permute.xlu2 %1261 }
 0x116   : > { %5165 = vst [vmem:[#allocation5_spill] sm:$0xff] %v3699_v20  ;;  %v3701_v21 = vpop.permute.xlu0 %1117  ;;  %v482_v22 = vpop.f32.mrf.mxu0  ;;  %v3889_v20 = vld [vmem:[#allocation2 + $0x81] sm:$0xff] }
 0x117   : > { %v483_v23 = vadd.f32 %v3522_v27, %v482_v22  ;;  %v1059_v22 = vld [vmem:[#allocation2 + $0x67] sm:$0xff] }
 0x119   : > { %v544_v24 = vmax.f32 %v483_v23, 0.0  ;;  %v3778_v23 = vld [vmem:[#allocation2 + $0x59] sm:$0xff] }
 0x11a   : > { %5174 = vst [vmem:[#allocation14_spill] sm:$0xff] %v3778_v23 }
 0x11b   : > { %583 = vst.msk [vmem:[#allocation2 + $0xa0] sm:$0xff] %vm559_vm1, %v544_v24  ;;  %1273 = vrot.lane.b32.xlu2 %v1081_v29, %s3398_s11  ;;  %1271 = vrot.lane.b32.xlu1 %v1080_v17, %s3398_s11 }
 0x11c   : > { %1554 = vrot.lane.b32.xlu0 %v3704_v28, %s3399_s14 }
 0x11d   : > { %v3711_v30 = vpop.permute.xlu2 %1213  ;;  %v3713_v31 = vpop.permute.xlu1 %1119 }
 0x11e   : > { %5167 = vst [vmem:[#allocation7_spill] sm:$0xff] %v3713_v31  ;;  %v3715_v32 = vpop.permute.xlu0 %1542  ;;  %v485_v34 = vpop.f32.mrf.mxu0 }
 0x11f   : > { %v486_v35 = vadd.f32 %v3522_v27, %v485_v34 }
 0x121   : > { %v545_v37 = vmax.f32 %v486_v35, 0.0 }
 0x123   : > { %584 = vst.msk [vmem:[#allocation2 + $0xa8] sm:$0xff] %vm559_vm1, %v545_v37  ;;  %1552 = vrot.lane.b32.xlu2 %v3718_v36, %s3399_s14  ;;  %1129 = vrot.lane.b32.xlu1 %v1056_v40, %s3399_s14 }
 0x124   : > { %2004 = vrot.lane.b32.xlu0 %v3720_v38, %s3398_s11 }
 0x125   : > { %v3728_v42 = vpop.permute.xlu2 %1638  ;;  %v3730_v43 = vpop.permute.xlu1 %1636 }
 0x126   : > { %v3732_v44 = vpop.permute.xlu0 %1169  ;;  %v488_v46 = vpop.f32.mrf.mxu0 }
 0x127   : > { %5168 = vst [vmem:[#allocation8_spill] sm:$0xff] %v3732_v44  ;;  %v489_v49 = vadd.f32 %v3522_v27, %v488_v46  ;;  %v3871_v44 = vld [vmem:[#allocation2 + $0x79] sm:$0xff] }
 0x129   : > { %v546_v50 = vmax.f32 %v489_v49, 0.0 }
 0x12b   : > { %585 = vst.msk [vmem:[#allocation2 + $0xb0] sm:$0xff] %vm559_vm1, %v546_v50  ;;  %1646 = vrot.lane.b32.xlu2 %v3718_v36, %s3398_s11  ;;  %1223 = vrot.lane.b32.xlu1 %v1056_v40, %s3398_s11 }
 0x12c   : > { %1648 = vrot.lane.b32.xlu0 %v3704_v28, %s3398_s11 }
 0x12d   : > { %v3741_v51 = vpop.permute.xlu2 %1900  ;;  %v3743_v52 = vpop.permute.xlu1 %1898 }
 0x12e   : > { %v3745_v53 = vpop.permute.xlu0 %1263  ;;  %v491_v54 = vpop.f32.mrf.mxu0 }
 0x12f   : > { %5169 = vst [vmem:[#allocation9_spill] sm:$0xff] %v3745_v53  ;;  %v492_v55 = vadd.f32 %v3522_v27, %v491_v54  ;;  %v3884_v53 = vld [vmem:[#allocation2 + $0x80] sm:$0xff] }
 0x131   : > { %v547_v56 = vmax.f32 %v492_v55, 0.0 }
 0x133   : > { %586 = vst.msk [vmem:[#allocation2 + $0xb8] sm:$0xff] %vm559_vm1, %v547_v56  ;;  %1131 = vrot.lane.b32.xlu2 %v1057_v60, %s3399_s14  ;;  %1908 = vrot.lane.b32.xlu1 %v3693_v18, %s3399_s14 }
 0x134   : > { %1133 = vrot.lane.b32.xlu0 %v1058_v58, %s3399_s14 }
 0x135   : > { %v3753_v62 = vpop.permute.xlu2 %1123  ;;  %v3755_v63 = vpop.permute.xlu1 %1121 }
 0x136   : > { %5170 = vst [vmem:[#allocation10_spill] sm:$0xff] %v3753_v62  ;;  %v3757_v0 = vpop.permute.xlu0 %1215  ;;  %v494_v2 = vpop.f32.mrf.mxu0 }
 0x137   : > { %5171 = vst [vmem:[#allocation11_spill] sm:$0xff] %v3755_v63  ;;  %v495_v3 = vadd.f32 %v3522_v27, %v494_v2  ;;  %v598_v63 = vlaneseq }
 0x138   : > { %5172 = vst [vmem:[#allocation12_spill] sm:$0xff] %v3757_v0  ;;  %v1828_v0 = vld [vmem:[#allocation2 + $0x9] sm:$0xff] }
 0x139   : > { %v548_v7 = vmax.f32 %v495_v3, 0.0 }
 0x13b   : > { %587 = vst.msk [vmem:[#allocation2 + $0xc0] sm:$0xff] %vm559_vm1, %v548_v7  ;;  %1225 = vrot.lane.b32.xlu2 %v1057_v60, %s3398_s11  ;;  %1556 = vrot.lane.b32.xlu1 %v3760_v4, %s3399_s14  ;;  %v3804_v60 = vld [vmem:[#allocation2 + $0x61] sm:$0xff]  ;;  %v3819_v7 = vld [vmem:[#allocation2 + $0x70] sm:$0xff] }
 0x13c   : > { %1227 = vrot.lane.b32.xlu0 %v1058_v58, %s3398_s11  ;;  %v3802_v58 = vld [vmem:[#allocation2 + $0x68] sm:$0xff]  ;;  %5180 = vst [vmem:[#allocation20_spill] sm:$0xff] %v3804_v60 }
 0x13d   : > { %v3767_v8 = vpop.permute.xlu2 %1546  ;;  %v3769_v9 = vpop.permute.xlu1 %1544  ;;  %5179 = vst [vmem:[#allocation19_spill] sm:$0xff] %v3802_v58 }
 0x13e   : > { %v3771_v14 = vpop.permute.xlu0 %1994  ;;  %v497_v15 = vpop.f32.mrf.mxu0  ;;  %5183 = vst [vmem:[#allocation23_spill] sm:$0xff] %v3819_v7 }
 0x13f   : > { %v498_v16 = vadd.f32 %v3522_v27, %v497_v15  ;;  %v1060_v15 = vld [vmem:[#allocation2 + $0x6f] sm:$0xff] }
 0x141   : > { %v549_v17 = vmax.f32 %v498_v16, 0.0 }
 0x143   : > { %588 = vst.msk [vmem:[#allocation2 + $0xc8] sm:$0xff] %vm559_vm1, %v549_v17  ;;  %1910 = vrot.lane.b32.xlu2 %v3720_v38, %s3399_s14  ;;  %1135 = vrot.lane.b32.xlu1 %v1059_v22, %s3399_s14 }
 0x144   : > { %2006 = vrot.lane.b32.xlu0 %v3778_v23, %s3398_s11 }
 0x145   : > { %v3782_v24 = vpop.permute.xlu2 %1173  ;;  %v3784_v29 = vpop.permute.xlu1 %1171 }
 0x146   : > { %5175 = vst [vmem:[#allocation15_spill] sm:$0xff] %v3782_v24  ;;  %v3786_v34 = vpop.permute.xlu0 %1996  ;;  %v500_v35 = vpop.f32.mrf.mxu0  ;;  %v3858_v24 = vld [vmem:[#allocation2 + $0x78] sm:$0xff] }
 0x147   : > { %5176 = vst [vmem:[#allocation16_spill] sm:$0xff] %v3784_v29  ;;  %v501_v37 = vadd.f32 %v3522_v27, %v500_v35  ;;  %v3832_v35 = vld [vmem:[#allocation2 + $0x69] sm:$0xff] }
 0x148   : > { %5186 = vst [vmem:[#allocation26_spill] sm:$0xff] %v3832_v35 }
 0x149   : > { %v550_v40 = vmax.f32 %v501_v37, 0.0  ;;  %5190 = vst [vmem:[#allocation30_spill] sm:$0xff] %v3858_v24 }
 0x14b   : > { %589 = vst.msk [vmem:[#allocation2 + $0xd0] sm:$0xff] %vm559_vm1, %v550_v40  ;;  %1912 = vrot.lane.b32.xlu2 %v3778_v23, %s3399_s14  ;;  %1229 = vrot.lane.b32.xlu1 %v1059_v22, %s3398_s11 }
 0x14c   : > { %1650 = vrot.lane.b32.xlu0 %v3760_v4, %s3398_s11  ;;  %v3920_v4 = vld [vmem:[#allocation2 + $0xa7] sm:$0xff] }
 0x14d   : > { %v3795_v46 = vpop.permute.xlu2 %1267  ;;  %v3797_v49 = vpop.permute.xlu1 %1265 }
 0x14e   : > { %5177 = vst [vmem:[#allocation17_spill] sm:$0xff] %v3795_v46  ;;  %v3799_v50 = vpop.permute.xlu0 %1548  ;;  %v503_v54 = vpop.f32.mrf.mxu0 }
 0x14f   : > { %5178 = vst [vmem:[#allocation18_spill] sm:$0xff] %v3797_v49  ;;  %v504_v55 = vadd.f32 %v3522_v27, %v503_v54  ;;  %v1062_v49 = vld [vmem:[#allocation2 + $0x7f] sm:$0xff] }
 0x151   : > { %v551_v56 = vmax.f32 %v504_v55, 0.0  ;;  %v3845_v55 = vld [vmem:[#allocation2 + $0x71] sm:$0xff] }
 0x152   : > { %5188 = vst [vmem:[#allocation28_spill] sm:$0xff] %v3845_v55 }
 0x153   : > { %590 = vst.msk [vmem:[#allocation2 + $0xd8] sm:$0xff] %vm559_vm1, %v551_v56  ;;  %1558 = vrot.lane.b32.xlu2 %v3802_v58, %s3399_s14  ;;  %2008 = vrot.lane.b32.xlu1 %v3804_v60, %s3398_s11  ;;  %v1061_v56 = vld [vmem:[#allocation2 + $0x77] sm:$0xff] }
 0x154   : > { %1914 = vrot.lane.b32.xlu0 %v3804_v60, %s3399_s14 }
 0x155   : > { %v3813_v2 = vpop.permute.xlu2 %1125  ;;  %v3815_v3 = vpop.permute.xlu1 %1217 }
 0x156   : > { %5181 = vst [vmem:[#allocation21_spill] sm:$0xff] %v3813_v2  ;;  %v3817_v27 = vpop.permute.xlu0 %1998 }
 0x157   : > { %5182 = vst [vmem:[#allocation22_spill] sm:$0xff] %v3815_v3 }
 0x15b   : > { %1137 = vrot.lane.b32.xlu2 %v1060_v15, %s3399_s14  ;;  %1652 = vrot.lane.b32.xlu1 %v3802_v58, %s3398_s11  ;;  %v3899_v58 = vld [vmem:[#allocation2 + $0x88] sm:$0xff] }
 0x15c   : > { %1560 = vrot.lane.b32.xlu0 %v3819_v7, %s3399_s14 }
 0x15d   : > { %v3826_v16 = vpop.permute.xlu2 %1219  ;;  %v3828_v17 = vpop.permute.xlu1 %1640 }
 0x15e   : > { %5184 = vst [vmem:[#allocation24_spill] sm:$0xff] %v3826_v16  ;;  %v3830_v22 = vpop.permute.xlu0 %1175 }
 0x15f   : > { %5185 = vst [vmem:[#allocation25_spill] sm:$0xff] %v3830_v22 }
 0x163   : > { %1231 = vrot.lane.b32.xlu2 %v1060_v15, %s3398_s11  ;;  %2010 = vrot.lane.b32.xlu1 %v3832_v35, %s3398_s11 }
 0x164   : > { %1916 = vrot.lane.b32.xlu0 %v3832_v35, %s3399_s14  ;;  %v1063_v35 = vld [vmem:[#allocation2 + $0x87] sm:$0xff] }
 0x165   : > { %v3839_v37 = vpop.permute.xlu2 %1642  ;;  %v3841_v40 = vpop.permute.xlu1 %1902 }
 0x166   : > { %v3843_v54 = vpop.permute.xlu0 %1269 }
 0x167   : > { %5187 = vst [vmem:[#allocation27_spill] sm:$0xff] %v3843_v54 }
 0x16b   : > { %2012 = vrot.lane.b32.xlu2 %v3845_v55, %s3398_s11  ;;  %1654 = vrot.lane.b32.xlu1 %v3819_v7, %s3398_s11 }
 0x16c   : > { %1139 = vrot.lane.b32.xlu0 %v1061_v56, %s3399_s14 }
 0x16d   : > { %v3852_v15 = vpop.permute.xlu2 %1904  ;;  %v3854_v5 = vpop.permute.xlu1 %1550 }
 0x16e   : > { %v3856_v22 = vpop.permute.xlu0 %1127 }
 0x16f   : > { %5189 = vst [vmem:[#allocation29_spill] sm:$0xff] %v3856_v22 }
 0x173   : > { %1656 = vrot.lane.b32.xlu2 %v3858_v24, %s3398_s11  ;;  %1918 = vrot.lane.b32.xlu1 %v3845_v55, %s3399_s14 }
 0x174   : > { %1233 = vrot.lane.b32.xlu0 %v1061_v56, %s3398_s11 }
 0x175   : > { %v3865_v54 = vpop.permute.xlu2 %1273  ;;  %v3867_v29 = vpop.permute.xlu1 %1644 }
 0x176   : > { %5191 = vst [vmem:[#allocation31_spill] sm:$0xff] %v3865_v54  ;;  %v3869_v46 = vpop.permute.xlu0 %1221 }
 0x177   : > { %5192 = vst [vmem:[#allocation32_spill] sm:$0xff] %v3869_v46 }
 0x17b   : > { %2014 = vrot.lane.b32.xlu2 %v3871_v44, %s3398_s11  ;;  %1141 = vrot.lane.b32.xlu1 %v1062_v49, %s3399_s14 }
 0x17c   : > { %1562 = vrot.lane.b32.xlu0 %v3858_v24, %s3399_s14 }
 0x17d   : > { %v3878_v11 = vpop.permute.xlu2 %1552  ;;  %v3880_v56 = vpop.permute.xlu1 %1906 }
 0x17e   : > { %v3882_v54 = vpop.permute.xlu0 %2000 }
 0x183   : > { %1658 = vrot.lane.b32.xlu2 %v3884_v53, %s3398_s11  ;;  %1235 = vrot.lane.b32.xlu1 %v1062_v49, %s3398_s11  ;;  %v1064_v49 = vld [vmem:[#allocation2 + $0x8f] sm:$0xff] }
 0x184   : > { %2016 = vrot.lane.b32.xlu0 %v3889_v20, %s3398_s11 }
 0x185   : > { %v3893_v55 = vpop.permute.xlu2 %1646  ;;  %v3895_v24 = vpop.permute.xlu1 %1177 }
 0x186   : > { %5193 = vst [vmem:[#allocation33_spill] sm:$0xff] %v3895_v24  ;;  %v3897_v7 = vpop.permute.xlu0 %2002  ;;  %v1065_v24 = vld [vmem:[#allocation2 + $0x97] sm:$0xff] }
 0x18b   : > { %1143 = vrot.lane.b32.xlu2 %v1063_v35, %s3399_s14  ;;  %1660 = vrot.lane.b32.xlu1 %v3899_v58, %s3398_s11 }
 0x18c   : > { %1145 = vrot.lane.b32.xlu0 %v1064_v49, %s3399_s14 }
 0x18d   : > { %v3905_v22 = vpop.permute.xlu2 %1131  ;;  %v3907_v2 = vpop.permute.xlu1 %1271 }
 0x18e   : > { %5194 = vst [vmem:[#allocation34_spill] sm:$0xff] %v3905_v22  ;;  %v3909_v46 = vpop.permute.xlu0 %1554  ;;  %v1066_v22 = vld [vmem:[#allocation2 + $0x9f] sm:$0xff] }
 0x18f   : > { %5195 = vst [vmem:[#allocation35_spill] sm:$0xff] %v3907_v2 }
 0x193   : > { %1237 = vrot.lane.b32.xlu2 %v1063_v35, %s3398_s11  ;;  %1147 = vrot.lane.b32.xlu1 %v1065_v24, %s3399_s14  ;;  %v3926_v35 = vshrl.u32 %v598_v63, 7 }
 0x194   : > { %1239 = vrot.lane.b32.xlu0 %v1064_v49, %s3398_s11 }
 0x195   : > { %v3914_v62 = vpop.permute.xlu2 %1225  ;;  %v3916_v60 = vpop.permute.xlu1 %1129  ;;  %v600_v28 = vadd.s32 8, %v3926_v35 }
 0x196   : > { %5196 = vst [vmem:[#allocation36_spill] sm:$0xff] %v3914_v62  ;;  %v3918_v16 = vpop.permute.xlu0 %2004 }
 0x197   : > { %5197 = vst [vmem:[#allocation37_spill] sm:$0xff] %v3916_v60  ;;  %v1470_v60 = vld [vmem:[#allocation2 + $0x8] sm:$0xff]  ;;  %v642_v63 = vand.u32 15, %v600_v28  ;;  %v2090_v28 = vsel %vm559_vm1, %v1828_v0, %v3672_v6  ;;  %v1471_v0 = vld [vmem:[#allocation2 + $0x10] sm:$0xff] }
 0x198   : > { %v1732_v23 = vsel %vm559_vm1, %v1470_v60, %v3697_v19 }
 0x199   : > { %vm1797_vm3 = vcmp.lt.s32.totalorder %v642_v63, 15 }
 0x19b   : > { %1149 = vrot.lane.b32.xlu2 %v1066_v22, %s3399_s14  ;;  %1241 = vrot.lane.b32.xlu1 %v1065_v24, %s3398_s11  ;;  %v1764_v24 = vsel %vm1341_vm2, %v1732_v23, %v3730_v43  ;;  %v2092_v23 = vsel %vm559_vm1, %v3555_v57, %v3741_v51  ;;  %v1733_v51 = vsel %vm559_vm1, %v1471_v0, %v3662_v1 }
 0x19c   : > { %1151 = vrot.lane.b32.xlu0 %v3920_v4, %s3399_s14 }
 0x19d   : > { %v3928_v49 = vpop.permute.xlu2 %1910  ;;  %v3930_v2 = vpop.permute.xlu1 %1223 }
 0x19e   : > { %5198 = vst [vmem:[#allocation38_spill] sm:$0xff] %v3930_v2  ;;  %v3932_v62 = vpop.permute.xlu0 %1648  ;;  %v1829_v2 = vld [vmem:[#allocation2 + $0x11] sm:$0xff] }
 0x19f   : > { %v2091_v19 = vsel %vm559_vm1, %v1829_v2, %v3743_v52  ;;  %v2124_v52 = vsel %vm1341_vm2, %v2092_v23, %v3817_v27  ;;  %v1765_v2 = vsel %vm1341_vm2, %v1733_v51, %v3728_v42  ;;  %v3978_v27 = vld [vmem:[#allocation2 + $0xaf] sm:$0xff]  ;;  %v1734_v42 = vsel %vm559_vm1, %v3533_v39, %v3715_v32 }
 0x1a0   : > { %v2123_v43 = vsel %vm1341_vm2, %v2091_v19, %v3786_v34 }
 0x1a3   : > { %1243 = vrot.lane.b32.xlu2 %v1066_v22, %s3398_s11  ;;  %2282 = vrot.lane.b32.xlu1 %v1764_v24, %s3400_s15  ;;  %v2122_v22 = vsel %vm1341_vm2, %v2090_v28, %v3771_v14  ;;  %v2219_v24 = vsel %vm1797_vm3, %v2123_v43, 0.0  ;;  %v1735_v14 = vsel %vm559_vm1, %v3544_v48, %v3769_v9  ;;  %v1736_v9 = vsel %vm559_vm1, %v3557_v59, %v3767_v8  ;;  %v4013_v8 = vld [vmem:[#allocation2 + $0xbf] sm:$0xff] }
 0x1a4   : > { %1245 = vrot.lane.b32.xlu0 %v3920_v4, %s3398_s11  ;;  %v1767_v63 = vsel %vm1341_vm2, %v1735_v14, %v3839_v37  ;;  %v1766_v43 = vsel %vm1341_vm2, %v1734_v42, %v3828_v17  ;;  %v1768_v37 = vsel %vm1341_vm2, %v1736_v9, %v3867_v29  ;;  %v2094_v59 = vsel %vm559_vm1, %v3606_v26, %v3852_v15  ;;  %v4015_v17 = vld [vmem:[#allocation2 + $0xb7] sm:$0xff] }
 0x1a5   : > { %v3943_v3 = vpop.permute.xlu2 %1912  ;;  %v3945_v31 = vpop.permute.xlu1 %1908  ;;  %v2126_v23 = vsel %vm1341_vm2, %v2094_v59, %v3897_v7  ;;  %v602_v15 = vadd.s32 24, %v3926_v35  ;;  %v1737_v7 = vsel %vm559_vm1, %v3599_v25, %v3799_v50  ;;  %v2093_v25 = vsel %vm559_vm1, %v3580_v12, %v3841_v40 }
 0x1a6   : > { %v3949_v60 = vpop.permute.xlu0 %1133 }
 0x1a7   : > { %v656_v0 = vand.u32 15, %v602_v15  ;;  %v1738_v15 = vsel %vm559_vm1, %v3632_v45, %v3854_v5  ;;  %v1739_v45 = vsel %vm559_vm1, %v3623_v41, %v3878_v11  ;;  %v1074_v5 = vld [vmem:[#allocation2 + $0xdf] sm:$0xff]  ;;  %v606_v41 = vadd.s32 56, %v3926_v35 }
 0x1a8   : > { %v2576_v11 = vld [vmem:[%s5147_s3 + $0x20] sm:$0xf] }
 0x1a9   : > { %vm1799_vm4 = vcmp.lt.s32.totalorder %v656_v0, 15  ;;  %3236 = vmatpush.msk.msra.mxu1 %vm2678_vm6, %v2576_v11  ;;  %3308 = vmatpush.msk.msrb.mxu3 %vm2678_vm6, %v2576_v11  ;;  %v1740_v11 = vsel %vm559_vm1, %v3655_v61, %v3909_v46 }
 0x1ab   : > { %2410 = vrot.lane.b32.xlu2 %v2122_v22, %s3401_s16  ;;  %2412 = vrot.lane.b32.xlu1 %v2219_v24, %s3401_s16  ;;  %v604_v24 = vadd.s32 40, %v3926_v35 }
 0x1ac   : > { %2414 = vrot.lane.b32.xlu0 %v2124_v52, %s3401_s16  ;;  %v1769_v52 = vsel %vm1341_vm2, %v1737_v7, %v3893_v55  ;;  %v2095_v55 = vsel %vm559_vm1, %v3617_v33, %v3880_v56 }
 0x1ad   : > { %v3965_v34 = vpop.permute.xlu2 %1558  ;;  %v3967_v6 = vpop.permute.xlu1 %1556  ;;  %v670_v51 = vand.u32 15, %v604_v24  ;;  %v2127_v42 = vsel %vm1341_vm2, %v2095_v55, %v3918_v16  ;;  %v1073_v16 = vld [vmem:[#allocation2 + $0xd7] sm:$0xff]  ;;  %v1770_v24 = vsel %vm1341_vm2, %v1738_v15, %v3932_v62  ;;  %v2572_v15 = vld [vmem:[%s5147_s3] sm:$0xff] }
 0x1ae   : > { %v3969_v57 = vpop.permute.xlu0 %1227 }
 0x1af   : > { %vm1801_vm5 = vcmp.lt.s32.totalorder %v670_v51, 15  ;;  %v2096_v51 = vsel %vm559_vm1, %v3634_v47, %v3945_v31  ;;  %v2575_v31 = vld [vmem:[%s5147_s3 + $0x18] sm:$0xff] }
 0x1b0   : > { %v2223_v12 = vsel %vm1801_vm5, %v2127_v42, 0.0  ;;  %2694 = vmatpush.msra.mxu1 %v2575_v31  ;;  %3309 = vmatpush.msrb.mxu3 %v2575_v31  ;;  %v2573_v42 = vld [vmem:[%s5147_s3 + $0x8] sm:$0xff]  ;;  %v2098_v31 = vsel %vm559_vm1, %v3693_v18, %v3943_v3 }
 0x1b1   : > { %v1047_v3 = vld [vmem:[#allocation2 + $0x7] sm:$0xff] }
 0x1b3   : > { %2284 = vrot.lane.b32.xlu2 %v1765_v2, %s3400_s15  ;;  %1153 = vrot.lane.b32.xlu1 %v3978_v27, %s3399_s14 }
 0x1b4   : > { %2288 = vrot.lane.b32.xlu0 %v1767_v63, %s3400_s15  ;;  %v2125_v63 = vsel %vm1341_vm2, %v2093_v25, %v3882_v54  ;;  %v1072_v54 = vld [vmem:[#allocation2 + $0xcf] sm:$0xff] }
 0x1b5   : > { %v3986_v1 = vpop.permute.xlu2 %1137  ;;  %v3988_v19 = vpop.permute.xlu1 %1135  ;;  %v2221_v9 = vsel %vm1799_vm4, %v2125_v63, 0.0 }
 0x1b6   : > { %v3990_v48 = vpop.permute.xlu0 %2006 }
 0x1b7   : > { %v2128_v62 = vsel %vm1341_vm2, %v2096_v51, %v3990_v48  ;;  %v2574_v48 = vld [vmem:[%s5147_s3 + $0x10] sm:$0xff] }
 0x1b8   : > { %2695 = vmatpush.msra.mxu1 %v2574_v48  ;;  %3310 = vmatpush.msrb.mxu3 %v2574_v48  ;;  %v1741_v48 = vsel %vm559_vm1, %v3718_v36, %v3967_v6  ;;  %v635_v36 = vand.u32 15, %v3926_v35 }
 0x1ba   : > { %2696 = vmatpush.msra.mxu1 %v2573_v42  ;;  %3311 = vmatpush.msrb.mxu3 %v2573_v42  ;;  %vm1015_vm8 = vcmp.gt.s32.totalorder %v635_v36, 0  ;;  %v4222_v36 = vld [vmem:[#allocation2 + $0xa1] sm:$0xff] }
 0x1bb   : > { %2286 = vrot.lane.b32.xlu2 %v1766_v43, %s3400_s15  ;;  %1247 = vrot.lane.b32.xlu1 %v3978_v27, %s3398_s11  ;;  %v1071_v43 = vld [vmem:[#allocation2 + $0xc7] sm:$0xff] }
 0x1bc   : > { %2290 = vrot.lane.b32.xlu0 %v1768_v37, %s3400_s15  ;;  %2697 = vmatpush.msra.mxu1 %v2572_v15 }
 0x1bd   : > { %v4006_v28 = vpop.permute.xlu2 %1231  ;;  %v4008_v39 = vpop.permute.xlu1 %1229  ;;  %3312 = vmatpush.msrb.mxu3 %v2572_v15 }
 0x1be   : > { %v1651_v32 = vpop.permute.xlu0 %1650 }
 0x1bf   : > { %v1771_v25 = vsel %vm1341_vm2, %v1739_v45, %v1651_v32  ;;  %v684_v32 = vand.u32 15, %v606_v41 }
 0x1c1   : > { %vm1803_vm7 = vcmp.lt.s32.totalorder %v684_v32, 15 }
 0x1c3   : > { %1155 = vrot.lane.b32.xlu2 %v4015_v17, %s3399_s14  ;;  %2418 = vrot.lane.b32.xlu1 %v2126_v23, %s3401_s16 }
 0x1c4   : > { %1157 = vrot.lane.b32.xlu0 %v4013_v8, %s3399_s14 }
 0x1c5   : > { %v4024_v29 = vpop.permute.xlu2 %2012  ;;  %v4026_v22 = vpop.permute.xlu1 %2008 }
 0x1c6   : > { %v4028_v26 = vpop.permute.xlu0 %1914 }
 0x1c7   : > { %v2099_v15 = vsel %vm559_vm1, %v3720_v38, %v4028_v26  ;;  %v1048_v38 = vld [vmem:[#allocation2 + $0xf] sm:$0xff]  ;;  %v601_v26 = vadd.s32 16, %v3926_v35 }
 0x1cb   : > { %1249 = vrot.lane.b32.xlu2 %v4015_v17, %s3398_s11  ;;  %2292 = vrot.lane.b32.xlu1 %v1769_v52, %s3400_s15 }
 0x1cc   : > { %1251 = vrot.lane.b32.xlu0 %v4013_v8, %s3398_s11 }
 0x1cd   : > { %v4042_v14 = vpop.permute.xlu2 %1656  ;;  %v4044_v2 = vpop.permute.xlu1 %1652 }
 0x1ce   : > { %v4049_v50 = vpop.permute.xlu0 %1560  ;;  %v1772_v32 = vsel %vm1341_vm2, %v1740_v11, %v4044_v2  ;;  %v608_v2 = vadd.s32 72, %v3926_v35 }
 0x1d3   : > { %2416 = vrot.lane.b32.xlu2 %v2221_v9, %s3401_s16  ;;  %1159 = vrot.lane.b32.xlu1 %v1071_v43, %s3399_s14 }
 0x1d4   : > { %2420 = vrot.lane.b32.xlu0 %v2223_v12, %s3401_s16  ;;  %v2097_v12 = vsel %vm559_vm1, %v3675_v10, %v3928_v49  ;;  %v4147_v10 = vld [vmem:[#allocation2 + $0x91] sm:$0xff] }
 0x1d5   : > { %v4061_v40 = vpop.permute.xlu2 %2014  ;;  %v4063_v33 = vpop.permute.xlu1 %2010 }
 0x1d6   : > { %v4065_v56 = vpop.permute.xlu0 %1916  ;;  %v2130_v42 = vsel %vm1341_vm2, %v2098_v31, %v4063_v33  ;;  %v1309_v33 = vsel %vm559_vm1, %v1047_v3, %v3686_v13  ;;  %v1310_v3 = vsel %vm559_vm1, %v1048_v38, %v3701_v21  ;;  %v4238_v38 = vld [vmem:[#allocation2 + $0xa0] sm:$0xff] }
 0x1db   : > { %1161 = vrot.lane.b32.xlu2 %v1072_v54, %s3399_s14  ;;  %1253 = vrot.lane.b32.xlu1 %v1071_v43, %s3398_s11 }
 0x1dc   : > { %1163 = vrot.lane.b32.xlu0 %v1073_v16, %s3399_s14 }
 0x1dd   : > { %v4070_v37 = vpop.permute.xlu2 %1658  ;;  %v4072_v59 = vpop.permute.xlu1 %1654 }
 0x1de   : > { %v4074_v23 = vpop.permute.xlu0 %1139  ;;  %v1773_v61 = vsel %vm1341_vm2, %v1741_v48, %v4072_v59  ;;  %v4197_v59 = vld [vmem:[#allocation2 + $0x98] sm:$0xff] }
 0x1e3   : > { %1255 = vrot.lane.b32.xlu2 %v1072_v54, %s3398_s11  ;;  %2294 = vrot.lane.b32.xlu1 %v1770_v24, %s3400_s15  ;;  %v4142_v24 = vld [vmem:[#allocation2 + $0x89] sm:$0xff] }
 0x1e4   : > { %1257 = vrot.lane.b32.xlu0 %v1073_v16, %s3398_s11  ;;  %v2129_v16 = vsel %vm1341_vm2, %v2097_v12, %v4026_v22  ;;  %v1342_v12 = vsel %vm1341_vm2, %v1309_v33, %v3711_v30 }
 0x1e5   : > { %v4084_v7 = vpop.permute.xlu2 %1143  ;;  %v4086_v52 = vpop.permute.xlu1 %1918  ;;  %v2225_v51 = vsel %vm1803_vm7, %v2129_v16, 0.0  ;;  %v698_v16 = vand.u32 15, %v608_v2  ;;  %v1438_v13 = vsel %vm1015_vm8, %v1342_v12, 0.0 }
 0x1e6   : > { %v4088_v0 = vpop.permute.xlu0 %1233 }
 0x1e7   : > { %vm1805_vm12 = vcmp.lt.s32.totalorder %v698_v16, 15  ;;  %v649_v16 = vand.u32 15, %v601_v26 }
 0x1e9   : > { %vm1017_vm13 = vcmp.gt.s32.totalorder %v649_v16, 0  ;;  %v610_v16 = vadd.s32 88, %v3926_v35 }
 0x1eb   : > { %1165 = vrot.lane.b32.xlu1 %v1074_v5, %s3399_s14  ;;  %2422 = vrot.lane.b32.xlu2 %v2128_v62, %s3401_s16 }
 0x1ec   : > { %2296 = vrot.lane.b32.xlu0 %v1771_v25, %s3400_s15 }
 0x1ed   : > { %v4102_v55 = vpop.permute.xlu2 %1237  ;;  %v4104_v63 = vpop.permute.xlu1 %1141 }
 0x1ee   : > { %v4106_v47 = vpop.permute.xlu0 %1562 }
 0x1f3   : > { %1259 = vrot.lane.b32.xlu1 %v1074_v5, %s3398_s11  ;;  %1920 = vrot.lane.b32.xlu2 %v3871_v44, %s3399_s14  ;;  %v4157_v5 = vld [vmem:[#allocation2 + $0x90] sm:$0xff] }
 0x1f4   : > { %1564 = vrot.lane.b32.xlu0 %v3884_v53, %s3399_s14 }
 0x1f5   : > { %v4128_v9 = vpop.permute.xlu2 %1149  ;;  %v4130_v43 = vpop.permute.xlu1 %1235 }
 0x1f6   : > { %5199 = vst [vmem:[#allocation39_spill] sm:$0xff] %v4128_v9  ;;  %v4135_v54 = vpop.permute.xlu0 %2016 }
 0x1fb   : > { %2018 = vrot.lane.b32.xlu1 %v4142_v24, %s3398_s11  ;;  %2424 = vrot.lane.b32.xlu2 %v2225_v51, %s3401_s16 }
 0x1fc   : > { %2020 = vrot.lane.b32.xlu0 %v4147_v10, %s3398_s11 }
 0x1fd   : > { %v4151_v49 = vpop.permute.xlu2 %1243  ;;  %v4153_v22 = vpop.permute.xlu1 %1660 }
 0x1fe   : > { %v4155_v45 = vpop.permute.xlu0 %1145 }
 0x203   : > { %1922 = vrot.lane.b32.xlu1 %v3889_v20, %s3399_s14  ;;  %1662 = vrot.lane.b32.xlu2 %v4157_v5, %s3398_s11 }
 0x204   : > { %1566 = vrot.lane.b32.xlu0 %v3899_v58, %s3399_s14 }
 0x205   : > { %v4165_v62 = vpop.permute.xlu1 %1147  ;;  %v2411_v25 = vpop.permute.xlu2 %2410 }
 0x206   : > { %v4167_v41 = vpop.permute.xlu0 %1239 }
 0x20b   : > { %2298 = vrot.lane.b32.xlu1 %v1772_v32, %s3400_s15  ;;  %2426 = vrot.lane.b32.xlu2 %v2130_v42, %s3401_s16  ;;  %v2131_v32 = vsel %vm1341_vm2, %v2099_v15, %v4024_v29  ;;  %v4216_v42 = vld [vmem:[#allocation2 + $0x99] sm:$0xff] }
 0x20c   : > { %2300 = vrot.lane.b32.xlu0 %v1773_v61, %s3400_s15  ;;  %v2227_v61 = vsel %vm1805_vm12, %v2131_v32, 0.0 }
 0x20d   : > { %v4187_v18 = vpop.permute.xlu1 %1241  ;;  %v2285_v46 = vpop.permute.xlu2 %2284 }
 0x20e   : > { %v4190_v6 = vpop.permute.xlu0 %1151 }
 0x20f   : > { %5200 = vst [vmem:[#allocation40_spill] sm:$0xff] %v4190_v6 }
 0x213   : > { %1664 = vrot.lane.b32.xlu1 %v4197_v59, %s3398_s11  ;;  %1924 = vrot.lane.b32.xlu2 %v4142_v24, %s3399_s14 }
 0x214   : > { %1568 = vrot.lane.b32.xlu0 %v4157_v5, %s3399_s14 }
 0x215   : > { %v2283_v30 = vpop.permute.xlu1 %2282  ;;  %v2287_v51 = vpop.permute.xlu2 %2286 }
 0x216   : > { %v2507_v11 = vsel %vm2506_vm10, %v1438_v13, %v2283_v30  ;;  %v4209_v31 = vpop.permute.xlu0 %1245  ;;  %v3330_v13 = vld [vmem:[#allocation2 + $0x17] sm:$0xff] }
 0x217   : > { %v2540_v48 = vsel %vm2539_vm9, %v2507_v11, %v2411_v25  ;;  %v5201_v25 = vld [vmem:[#allocation12_spill] sm:$0xff]  ;;  %v5202_v30 = vld [vmem:[#allocation7_spill] sm:$0xff] }
 0x218   : > { %3237 = vmatmul.msk.f32.vlgmr.msra.gmra.mxu1 %vm2581_vm11, %v2540_v48  ;;  %v1343_v29 = vsel %vm1341_vm2, %v1310_v3, %v5201_v25  ;;  %v1311_v11 = vsel %vm559_vm1, %v3330_v13, %v5202_v30  ;;  %v5203_v48 = vld [vmem:[#allocation22_spill] sm:$0xff] }
 0x219   : > { %v2508_v2 = vsel %vm2506_vm10, %v1343_v29, %v2285_v46  ;;  %v1344_v32 = vsel %vm1341_vm2, %v1311_v11, %v5203_v48  ;;  %v5206_v29 = vld [vmem:[#allocation14_spill] sm:$0xff]  ;;  %v5208_v11 = vld [vmem:[#allocation13_spill] sm:$0xff] }
 0x21a   : > { %v1440_v46 = vsel %vm1017_vm13, %v1344_v32, 0.0  ;;  %v5207_v13 = vld [vmem:[#allocation6_spill] sm:$0xff]  ;;  %v1743_v48 = vsel %vm559_vm1, %v5208_v11, %v4049_v50  ;;  %v5209_v32 = vld [vmem:[#allocation11_spill] sm:$0xff] }
 0x21b   : > { %2022 = vrot.lane.b32.xlu1 %v4216_v42, %s3398_s11  ;;  %2428 = vrot.lane.b32.xlu2 %v2227_v61, %s3401_s16  ;;  %v2509_v3 = vsel %vm2506_vm10, %v1440_v46, %v2287_v51  ;;  %v1742_v30 = vsel %vm559_vm1, %v5207_v13, %v3965_v34  ;;  %v5210_v34 = vld [vmem:[#allocation24_spill] sm:$0xff]  ;;  %v3332_v11 = vld [vmem:[#allocation2 + $0x27] sm:$0xff] }
 0x21c   : > { %2024 = vrot.lane.b32.xlu0 %v4222_v36, %s3398_s11  ;;  %v1774_v51 = vsel %vm1341_vm2, %v1742_v30, %v4042_v14 }
 0x21d   : > { %v4230_v33 = vpop.permute.xlu2 %1155  ;;  %v2413_v12 = vpop.permute.xlu1 %2412 }
 0x21e   : > { %v2415_v21 = vpop.permute.xlu0 %2414  ;;  %v2541_v15 = vsel %vm2539_vm9, %v2508_v2, %v2413_v12  ;;  %v2100_v2 = vsel %vm559_vm1, %v5206_v29, %v4065_v56  ;;  %v712_v29 = vand.u32 15, %v610_v16 }
 0x21f   : > { %v2542_v12 = vsel %vm2539_vm9, %v2509_v3, %v2415_v21  ;;  %v2132_v56 = vsel %vm1341_vm2, %v2100_v2, %v4061_v40  ;;  %v3331_v21 = vld [vmem:[#allocation2 + $0x1f] sm:$0xff]  ;;  %v1775_v3 = vsel %vm1341_vm2, %v1743_v48, %v4070_v37  ;;  %v5213_v48 = vld [vmem:[#allocation10_spill] sm:$0xff] }
 0x220   : > { %3238 = vmatmul.msk.f32.gmra.mxu1 %vm2581_vm11, %v2541_v15  ;;  %v603_v15 = vadd.s32 32, %v3926_v35  ;;  %v1312_v46 = vsel %vm559_vm1, %v3331_v21, %v5209_v32  ;;  %v5212_v37 = vld [vmem:[#allocation20_spill] sm:$0xff]  ;;  %vm1807_vm14 = vcmp.lt.s32.totalorder %v712_v29, 15  ;;  %v4291_v21 = vld [vmem:[#allocation2 + $0xa8] sm:$0xff] }
 0x221   : > { %v1345_v14 = vsel %vm1341_vm2, %v1312_v46, %v5210_v34  ;;  %v4303_v29 = vld [vmem:[#allocation2 + $0xd8] sm:$0xff] }
 0x222   : > { %v663_v50 = vand.u32 15, %v603_v15 }
 0x223   : > { %1926 = vrot.lane.b32.xlu1 %v4147_v10, %s3399_s14  ;;  %1666 = vrot.lane.b32.xlu2 %v4238_v38, %s3398_s11 }
 0x224   : > { %1570 = vrot.lane.b32.xlu0 %v4197_v59, %s3399_s14  ;;  %vm1019_vm15 = vcmp.gt.s32.totalorder %v663_v50, 0  ;;  %v4305_v50 = vld [vmem:[#allocation2 + $0xa9] sm:$0xff] }
 0x225   : > { %v4246_v26 = vpop.permute.xlu2 %1249  ;;  %v4248_v61 = vpop.permute.xlu1 %1153 }
 0x226   : > { %5204 = vst [vmem:[#allocation12_spill] sm:$0xff] %v4246_v26  ;;  %v2289_v25 = vpop.permute.xlu0 %2288  ;;  %v5230_v26 = vld [vmem:[#allocation23_spill] sm:$0xff] }
 0x227   : > { %5205 = vst [vmem:[#allocation7_spill] sm:$0xff] %v4248_v61  ;;  %v2510_v40 = vsel %vm2506_vm10, %v1345_v14, %v2289_v25  ;;  %v5214_v25 = vld [vmem:[#allocation32_spill] sm:$0xff] }
 0x228   : > { %3239 = vmatmul.msk.f32.gmra.mxu1 %vm2581_vm11, %v2542_v12  ;;  %v5223_v61 = vld [vmem:[#allocation36_spill] sm:$0xff] }
 0x22b   : > { %2302 = vrot.lane.b32.xlu1 %v1774_v51, %s3400_s15  ;;  %2430 = vrot.lane.b32.xlu2 %v2132_v56, %s3401_s16  ;;  %v2101_v51 = vsel %vm559_vm1, %v5212_v37, %v4086_v52  ;;  %v1313_v56 = vsel %vm559_vm1, %v3332_v11, %v5213_v48  ;;  %v4322_v11 = vld [vmem:[#allocation2 + $0xe8] sm:$0xff]  ;;  %v4324_v48 = vld [vmem:[#allocation2 + $0xd9] sm:$0xff] }
 0x22c   : > { %2304 = vrot.lane.b32.xlu0 %v1775_v3, %s3400_s15  ;;  %v2133_v16 = vsel %vm1341_vm2, %v2101_v51, %v4135_v54  ;;  %v1346_v15 = vsel %vm1341_vm2, %v1313_v56, %v5214_v25  ;;  %v4330_v56 = vld [vmem:[#allocation2 + $0xb0] sm:$0xff] }
 0x22d   : > { %v4278_v2 = vpop.permute.xlu1 %1247  ;;  %v2417_v12 = vpop.permute.xlu2 %2416  ;;  %v2229_v32 = vsel %vm1807_vm14, %v2133_v16, 0.0  ;;  %v1442_v52 = vsel %vm1019_vm15, %v1346_v15, 0.0  ;;  %v5217_v16 = vld [vmem:[#allocation21_spill] sm:$0xff]  ;;  %v5218_v15 = vld [vmem:[#allocation38_spill] sm:$0xff] }
 0x22e   : > { %5211 = vst [vmem:[#allocation22_spill] sm:$0xff] %v4278_v2  ;;  %v2291_v13 = vpop.permute.xlu0 %2290  ;;  %v2543_v30 = vsel %vm2539_vm9, %v2510_v40, %v2417_v12  ;;  %v4311_v40 = vld [vmem:[#allocation2 + $0xe9] sm:$0xff]  ;;  %v612_v2 = vadd.s32 104, %v3926_v35 }
 0x22f   : > { %v2511_v54 = vsel %vm2506_vm10, %v1442_v52, %v2291_v13 }
 0x230   : > { %3240 = vmatmul.msk.f32.gmra.mxu1 %vm2581_vm11, %v2543_v30 }
 0x233   : > { %1668 = vrot.lane.b32.xlu1 %v4291_v21, %s3398_s11  ;;  %1928 = vrot.lane.b32.xlu2 %v4216_v42, %s3399_s14 }
 0x234   : > { %2432 = vrot.lane.b32.xlu0 %v2229_v32, %s3401_s16 }
 0x235   : > { %v4299_v46 = vpop.permute.xlu2 %1161  ;;  %v2419_v3 = vpop.permute.xlu1 %2418 }
 0x236   : > { %v1158_v34 = vpop.permute.xlu0 %1157  ;;  %v2544_v14 = vsel %vm2539_vm9, %v2511_v54, %v2419_v3 }
 0x237   : > { %v1330_v12 = vsel %vm559_vm1, %v3978_v27, %v1158_v34  ;;  %v3333_v27 = vld [vmem:[#allocation2 + $0x2f] sm:$0xff] }
 0x238   : > { %3241 = vmatmul.msk.f32.gmra.mxu1 %vm2581_vm11, %v2544_v14  ;;  %v1314_v25 = vsel %vm559_vm1, %v3333_v27, %v5217_v16 }
 0x239   : > { %v1347_v32 = vsel %vm1341_vm2, %v1314_v25, %v5218_v15 }
 0x23b   : > { %1586 = vrot.lane.b32.xlu1 %v4303_v29, %s3399_s14  ;;  %2026 = vrot.lane.b32.xlu2 %v4305_v50, %s3398_s11 }
 0x23c   : > { %2042 = vrot.lane.b32.xlu0 %v4311_v40, %s3398_s11 }
 0x23d   : > { %v1256_v13 = vpop.permute.xlu2 %1255  ;;  %v2293_v30 = vpop.permute.xlu1 %2292 }
 0x23e   : > { %v4318_v37 = vsel %vm1341_vm2, %v1330_v12, %v1256_v13  ;;  %v4320_v51 = vpop.permute.xlu0 %1251  ;;  %v2512_v3 = vsel %vm2506_vm10, %v1347_v32, %v2293_v30  ;;  %v605_v12 = vadd.s32 48, %v3926_v35  ;;  %v4346_v13 = vld [vmem:[#allocation2 + $0xe0] sm:$0xff]  ;;  %v1329_v30 = vsel %vm559_vm1, %v3920_v4, %v4230_v33 }
 0x23f   : > { %5215 = vst [vmem:[#allocation14_spill] sm:$0xff] %v4318_v37  ;;  %v5222_v37 = vld [vmem:[#allocation19_spill] sm:$0xff] }
 0x240   : > { %5216 = vst [vmem:[#allocation6_spill] sm:$0xff] %v4320_v51  ;;  %v677_v25 = vand.u32 15, %v605_v12  ;;  %v1744_v51 = vsel %vm559_vm1, %v5222_v37, %v4106_v47  ;;  %v4367_v12 = vld [vmem:[#allocation2 + $0xb1] sm:$0xff] }
 0x241   : > { %v1776_v33 = vsel %vm1341_vm2, %v1744_v51, %v4153_v22 }
 0x242   : > { %vm1021_vm3 = vcmp.gt.s32.totalorder %v677_v25, 0 }
 0x243   : > { %1684 = vrot.lane.b32.xlu1 %v4322_v11, %s3398_s11  ;;  %1944 = vrot.lane.b32.xlu2 %v4324_v48, %s3399_s14 }
 0x244   : > { %1670 = vrot.lane.b32.xlu0 %v4330_v56, %s3398_s11 }
 0x245   : > { %v1160_v52 = vpop.permute.xlu1 %1159  ;;  %v2423_v54 = vpop.permute.xlu2 %2422 }
 0x246   : > { %v2421_v34 = vpop.permute.xlu0 %2420 }
 0x247   : > { %v2545_v14 = vsel %vm2539_vm9, %v2512_v3, %v2421_v34  ;;  %v3334_v3 = vld [vmem:[#allocation2 + $0x37] sm:$0xff]  ;;  %v5221_v34 = vld [vmem:[#allocation29_spill] sm:$0xff] }
 0x248   : > { %3242 = vmatmul.msk.f32.gmra.mxu1 %vm2581_vm11, %v2545_v14  ;;  %v1315_v14 = vsel %vm559_vm1, %v3334_v3, %v5221_v34  ;;  %v4384_v34 = vld [vmem:[#allocation2 + $0xe1] sm:$0xff] }
 0x249   : > { %v1348_v4 = vsel %vm1341_vm2, %v1315_v14, %v5223_v61  ;;  %v1331_v61 = vsel %vm559_vm1, %v4015_v17, %v1160_v52  ;;  %v4388_v14 = vld [vmem:[#allocation2 + $0xb8] sm:$0xff]  ;;  %v5225_v52 = vld [vmem:[#allocation37_spill] sm:$0xff] }
 0x24a   : > { %v1444_v47 = vsel %vm1021_vm3, %v1348_v4, 0.0  ;;  %v3335_v17 = vld [vmem:[#allocation2 + $0x3f] sm:$0xff] }
 0x24b   : > { %1572 = vrot.lane.b32.xlu1 %v4238_v38, %s3399_s14  ;;  %1930 = vrot.lane.b32.xlu2 %v4222_v36, %s3399_s14  ;;  %v1316_v4 = vsel %vm559_vm1, %v3335_v17, %v5225_v52 }
 0x24c   : > { %1588 = vrot.lane.b32.xlu0 %v4346_v13, %s3399_s14 }
 0x24d   : > { %v1254_v27 = vpop.permute.xlu1 %1253  ;;  %v1921_v16 = vpop.permute.xlu2 %1920 }
 0x24e   : > { %v4354_v15 = vsel %vm1341_vm2, %v1329_v30, %v1254_v27  ;;  %v4356_v32 = vpop.permute.xlu0 %1163  ;;  %v4372_v30 = vld [vmem:[#allocation2 + $0xf0] sm:$0xff] }
 0x24f   : > { %5219 = vst [vmem:[#allocation13_spill] sm:$0xff] %v4354_v15 }
 0x250   : > { %5220 = vst [vmem:[#allocation11_spill] sm:$0xff] %v4356_v32  ;;  %v3337_v32 = vld [vmem:[#allocation2 + $0x4f] sm:$0xff] }
 0x253   : > { %2028 = vrot.lane.b32.xlu1 %v4367_v12, %s3398_s11  ;;  %2306 = vrot.lane.b32.xlu2 %v1776_v33, %s3400_s15 }
 0x254   : > { %1686 = vrot.lane.b32.xlu0 %v4372_v30, %s3398_s11 }
 0x255   : > { %v2295_v37 = vpop.permute.xlu1 %2294  ;;  %v2425_v27 = vpop.permute.xlu2 %2424 }
 0x256   : > { %v2513_v22 = vsel %vm2506_vm10, %v1444_v47, %v2295_v37  ;;  %v1258_v51 = vpop.permute.xlu0 %1257 }
 0x257   : > { %v4380_v25 = vsel %vm1341_vm2, %v1331_v61, %v1258_v51  ;;  %v2546_v3 = vsel %vm2539_vm9, %v2513_v22, %v2423_v54  ;;  %v1349_v54 = vsel %vm1341_vm2, %v1316_v4, %v3969_v57  ;;  %v4401_v51 = vld [vmem:[#allocation2 + $0xf1] sm:$0xff] }
 0x258   : > { %5224 = vst [vmem:[#allocation24_spill] sm:$0xff] %v4380_v25  ;;  %3243 = vmatmul.msk.f32.gmra.mxu1 %vm2581_vm11, %v2546_v3  ;;  %v1332_v3 = vsel %vm559_vm1, %v4013_v8, %v4299_v46  ;;  %v4415_v4 = vld [vmem:[#allocation2 + $0xf8] sm:$0xff] }
 0x25b   : > { %1946 = vrot.lane.b32.xlu1 %v4384_v34, %s3399_s14 }
 0x25c   : > { %1672 = vrot.lane.b32.xlu0 %v4388_v14, %s3398_s11 }
 0x25d   : > { %v4394_v33 = vpop.permute.xlu1 %1165  ;;  %v1663_v47 = vpop.permute.xlu2 %1662 }
 0x25e   : > { %5226 = vst [vmem:[#allocation20_spill] sm:$0xff] %v4394_v33  ;;  %v2297_v37 = vpop.permute.xlu0 %2296  ;;  %v4445_v33 = vld [vmem:[#allocation2 + $0xc1] sm:$0xff] }
 0x25f   : > { %v2514_v61 = vsel %vm2506_vm10, %v1349_v54, %v2297_v37  ;;  %v5228_v54 = vld [vmem:[#allocation26_spill] sm:$0xff] }
 0x260   : > { %v2547_v22 = vsel %vm2539_vm9, %v2514_v61, %v2425_v27  ;;  %v2102_v37 = vsel %vm559_vm1, %v5228_v54, %v1921_v16  ;;  %v2827_v54 = vld [vmem:[%s5149_s5] sm:$0xf] }
 0x261   : > { %3244 = vmatmul.msk.f32.gmra.mxu1 %vm2581_vm11, %v2547_v22  ;;  %3269 = vmatpush.msk.msra.mxu2 %vm2678_vm6, %v2827_v54 }
 0x262   : > { %3313 = vmatpush.msk.msra.mxu3 %vm2678_vm6, %v2827_v54 }
 0x263   : > { %2044 = vrot.lane.b32.xlu1 %v4401_v51, %s3398_s11 }
 0x264   : > { %1590 = vrot.lane.b32.xlu0 %v4322_v11, %s3399_s14 }
 0x265   : > { %v1260_v57 = vpop.permute.xlu1 %1259  ;;  %v2427_v52 = vpop.permute.xlu2 %2426 }
 0x266   : > { %v4411_v17 = vsel %vm1341_vm2, %v1332_v3, %v1260_v57  ;;  %v1565_v27 = vpop.permute.xlu0 %1564  ;;  %v607_v3 = vadd.s32 64, %v3926_v35  ;;  %v4424_v57 = vld [vmem:[#allocation2 + $0xb9] sm:$0xff] }
 0x267   : > { %5227 = vst [vmem:[#allocation10_spill] sm:$0xff] %v4411_v17  ;;  %v1745_v6 = vsel %vm559_vm1, %v5230_v26, %v1565_v27  ;;  %v726_v27 = vand.u32 15, %v612_v2 }
 0x268   : > { %v691_v25 = vand.u32 15, %v607_v3 }
 0x269   : > { %vm1809_vm5 = vcmp.lt.s32.totalorder %v726_v27, 15 }
 0x26a   : > { %vm1023_vm4 = vcmp.gt.s32.totalorder %v691_v25, 0 }
 0x26b   : > { %1932 = vrot.lane.b32.xlu1 %v4305_v50, %s3399_s14 }
 0x26c   : > { %1688 = vrot.lane.b32.xlu0 %v4415_v4, %s3398_s11 }
 0x26d   : > { %v2019_v61 = vpop.permute.xlu1 %2018  ;;  %v1925_v22 = vpop.permute.xlu2 %1924 }
 0x26e   : > { %v2134_v8 = vsel %vm1341_vm2, %v2102_v37, %v2019_v61  ;;  %v2021_v46 = vpop.permute.xlu0 %2020  ;;  %v3336_v37 = vld [vmem:[#allocation2 + $0x47] sm:$0xff] }
 0x26f   : > { %2434 = vrot.lane.b32.xlu2 %v2134_v8, %s3401_s16  ;;  %v5229_v61 = vld [vmem:[#allocation34_spill] sm:$0xff] }
 0x270   : > { %v1317_v8 = vsel %vm559_vm1, %v3336_v37, %v5229_v61 }
 0x271   : > { %v1350_v3 = vsel %vm1341_vm2, %v1317_v8, %v4008_v39  ;;  %v1777_v39 = vsel %vm1341_vm2, %v1745_v6, %v1663_v47  ;;  %v5231_v8 = vld [vmem:[#allocation28_spill] sm:$0xff] }
 0x272   : > { %v1446_v37 = vsel %vm1023_vm4, %v1350_v3, 0.0  ;;  %v1318_v3 = vsel %vm559_vm1, %v3337_v32, %v3949_v60 }
 0x273   : > { %2030 = vrot.lane.b32.xlu1 %v4424_v57, %s3398_s11 }
 0x274   : > { %1576 = vrot.lane.b32.xlu0 %v4330_v56, %s3399_s14 }
 0x275   : > { %v1923_v17 = vpop.permute.xlu1 %1922  ;;  %v2429_v15 = vpop.permute.xlu2 %2428 }
 0x276   : > { %v1567_v16 = vpop.permute.xlu0 %1566  ;;  %v2103_v9 = vsel %vm559_vm1, %v5231_v8, %v1923_v17  ;;  %v4489_v8 = vld [vmem:[%s5148_s4] ss:$0 sm:$0xff] }
 0x277   : > { %1574 = vrot.lane.b32.xlu2 %v4291_v21, %s3399_s14 }
 0x27b   : > { %1948 = vrot.lane.b32.xlu1 %v4311_v40, %s3399_s14 }
 0x27c   : > { %2032 = vrot.lane.b32.xlu0 %v4445_v33, %s3398_s11 }
 0x27d   : > { %v2299_v54 = vpop.permute.xlu1 %2298  ;;  %v1667_v6 = vpop.permute.xlu2 %1666 }
 0x27e   : > { %v2515_v25 = vsel %vm2506_vm10, %v1446_v37, %v2299_v54  ;;  %v2301_v61 = vpop.permute.xlu0 %2300  ;;  %v1351_v37 = vsel %vm1341_vm2, %v1318_v3, %v4006_v28  ;;  %v2135_v54 = vsel %vm1341_vm2, %v2103_v9, %v2021_v46  ;;  %v5232_v28 = vld [vmem:[#allocation30_spill] sm:$0xff] }
 0x27f   : > { %2308 = vrot.lane.b32.xlu2 %v1777_v39, %s3400_s15  ;;  %v2548_v26 = vsel %vm2539_vm9, %v2515_v25, %v2427_v52  ;;  %v2516_v2 = vsel %vm2506_vm10, %v1351_v37, %v2301_v61  ;;  %v2231_v52 = vsel %vm1809_vm5, %v2135_v54, 0.0  ;;  %v1746_v9 = vsel %vm559_vm1, %v5232_v28, %v1567_v16  ;;  %v4473_v46 = vld [vmem:[#allocation2 + $0x101] sm:$0xff] }
 0x280   : > { %3245 = vmatmul.msk.f32.gmra.mxu1 %vm2581_vm11, %v2548_v26  ;;  %v2549_v60 = vsel %vm2539_vm9, %v2516_v2, %v2429_v15  ;;  %5233 = vst [vmem:[#allocation32_spill] sm:$0xff] %v4473_v46  ;;  %v4478_v26 = vld [vmem:[#allocation2 + $0xf9] sm:$0xff]  ;;  %v2104_v15 = vsel %vm559_vm1, %v3871_v44, %v1925_v22  ;;  %v609_v16 = vadd.s32 80, %v3926_v35 }
 0x281   : > { %v4495_v22 = vld [vmem:[#allocation2 + $0xc0] sm:$0xff] }
 0x282   : > { %v705_v54 = vand.u32 15, %v609_v16 }
 0x283   : > { %1934 = vrot.lane.b32.xlu1 %v4367_v12, %s3399_s14 }
 0x284   : > { %1950 = vrot.lane.b32.xlu0 %v4401_v51, %s3399_s14  ;;  %vm1025_vm6 = vcmp.gt.s32.totalorder %v705_v54, 0 }
 0x285   : > { %v1665_v47 = vpop.permute.xlu1 %1664  ;;  %v2431_v61 = vpop.permute.xlu2 %2430 }
 0x286   : > { %v1569_v17 = vpop.permute.xlu0 %1568  ;;  %v1778_v32 = vsel %vm1341_vm2, %v1746_v9, %v1665_v47 }
 0x287   : > { %2436 = vrot.lane.b32.xlu2 %v2231_v52, %s3401_s16 }
 0x288   : > { %3246 = vmatmul.msk.f32.gmra.mxu1 %vm2581_vm11, %v2549_v60  ;;  %v3338_v60 = vld [vmem:[#allocation2 + $0x57] sm:$0xff] }
 0x289   : > { %v1319_v28 = vsel %vm559_vm1, %v3338_v60, %v3988_v19 }
 0x28a   : > { %v1352_v9 = vsel %vm1341_vm2, %v1319_v28, %v4088_v0  ;;  %v1747_v0 = vsel %vm559_vm1, %v3884_v53, %v1569_v17 }
 0x28b   : > { %2310 = vrot.lane.b32.xlu1 %v1778_v32, %s3400_s15  ;;  %v4506_v32 = vld [vmem:[#allocation2 + $0xc9] sm:$0xff]  ;;  %v1779_v28 = vsel %vm1341_vm2, %v1747_v0, %v1667_v6  ;;  %v4534_v0 = vld [vmem:[#allocation2 + $0x100] sm:$0xff] }
 0x28c   : > { %2048 = vrot.lane.b32.xlu0 %v4473_v46, %s3398_s11  ;;  %5234 = vst [vmem:[#allocation21_spill] sm:$0xff] %v4534_v0 }
 0x28d   : > { %v2023_v25 = vpop.permute.xlu1 %2022  ;;  %v4499_v47 = vpop.permute.xlu2 %1928 }
 0x28e   : > { %v2025_v39 = vpop.permute.xlu0 %2024  ;;  %v2136_v27 = vsel %vm1341_vm2, %v2104_v15, %v2023_v25  ;;  %v1448_v25 = vsel %vm1025_vm6, %v1352_v9, 0.0 }
 0x28f   : > { %2046 = vrot.lane.b32.xlu2 %v4478_v26, %s3398_s11 }
 0x293   : > { %2438 = vrot.lane.b32.xlu1 %v2136_v27, %s3401_s16 }
 0x294   : > { %1936 = vrot.lane.b32.xlu0 %v4424_v57, %s3399_s14 }
 0x295   : > { %v2699_v3 = vpop.f32.mrf.mxu1  ;;  %v1927_v37 = vpop.permute.xlu1 %1926 }
 0x296   : > { %v2700_v2 = vadd.f32 %v4489_v8, %v2699_v3  ;;  %v1571_v44 = vpop.permute.xlu0 %1570  ;;  %v2027_v60 = vpop.permute.xlu2 %2026  ;;  %v2105_v17 = vsel %vm559_vm1, %v3889_v20, %v1927_v37 }
 0x297   : > { %1674 = vrot.lane.b32.xlu2 %v4495_v22, %s3398_s11 }
 0x298   : > { %v2795_v52 = vmax.f32 %v2700_v2, 0.0  ;;  %v614_v2 = vadd.s32 120, %v3926_v35 }
 0x29a   : > { %3270 = vmatmul.msk.f32.vlgmr.msra.gmra.mxu2 %vm559_vm1, %v2795_v52  ;;  %v740_v9 = vand.u32 15, %v614_v2  ;;  %v4547_v2 = vld [vmem:[#allocation2 + $0xc8] sm:$0xff] }
 0x29b   : > { %1578 = vrot.lane.b32.xlu1 %v4388_v14, %s3399_s14 }
 0x29c   : > { %2034 = vrot.lane.b32.xlu0 %v4506_v32, %s3398_s11  ;;  %vm1811_vm7 = vcmp.lt.s32.totalorder %v740_v9, 15 }
 0x29d   : > { %v2702_v15 = vpop.f32.mrf.mxu1  ;;  %v2303_v16 = vpop.permute.xlu1 %2302 }
 0x29e   : > { %v2703_v27 = vadd.f32 %v4489_v8, %v2702_v15  ;;  %v2517_v19 = vsel %vm2506_vm10, %v1448_v25, %v2303_v16  ;;  %v2305_v3 = vpop.permute.xlu0 %2304  ;;  %v3339_v25 = vld [vmem:[#allocation2 + $0x5f] sm:$0xff] }
 0x29f   : > { %1592 = vrot.lane.b32.xlu2 %v4372_v30, %s3399_s14  ;;  %v2550_v54 = vsel %vm2539_vm9, %v2517_v19, %v2431_v61  ;;  %v1320_v53 = vsel %vm559_vm1, %v3339_v25, %v3986_v1  ;;  %v2137_v1 = vsel %vm1341_vm2, %v2105_v17, %v2025_v39  ;;  %v1748_v25 = vsel %vm559_vm1, %v3899_v58, %v1571_v44 }
 0x2a0   : > { %v2796_v52 = vmax.f32 %v2703_v27, 0.0  ;;  %3247 = vmatmul.msk.f32.gmra.mxu1 %vm2581_vm11, %v2550_v54  ;;  %v1353_v61 = vsel %vm1341_vm2, %v1320_v53, %v4130_v43  ;;  %v2233_v43 = vsel %vm1811_vm7, %v2137_v1, 0.0  ;;  %v4555_v53 = vld [vmem:[#allocation2 + $0x109] sm:$0xff]  ;;  %v2106_v44 = vsel %vm559_vm1, %v4142_v24, %v4499_v47 }
 0x2a1   : > { %v2518_v6 = vsel %vm2506_vm10, %v1353_v61, %v2305_v3  ;;  %v4543_v3 = vpop.permute.xlu2 %1944  ;;  %v2138_v1 = vsel %vm1341_vm2, %v2106_v44, %v2027_v60 }
 0x2a2   : > { %3271 = vmatmul.msk.f32.gmra.mxu2 %vm559_vm1, %v2796_v52 }
 0x2a3   : > { %2312 = vrot.lane.b32.xlu1 %v1779_v28, %s3400_s15 }
 0x2a4   : > { %1952 = vrot.lane.b32.xlu0 %v4478_v26, %s3399_s14 }
 0x2a5   : > { %v1669_v15 = vpop.permute.xlu1 %1668  ;;  %v2705_v16 = vpop.f32.mrf.mxu1 }
 0x2a6   : > { %v2433_v27 = vpop.permute.xlu0 %2432  ;;  %v2706_v19 = vadd.f32 %v4489_v8, %v2705_v16  ;;  %v1780_v17 = vsel %vm1341_vm2, %v1748_v25, %v1669_v15  ;;  %v4572_v15 = vld [vmem:[#allocation2 + $0xd0] sm:$0xff] }
 0x2a7   : > { %1690 = vrot.lane.b32.xlu2 %v4534_v0, %s3398_s11  ;;  %v2551_v20 = vsel %vm2539_vm9, %v2518_v6, %v2433_v27 }
 0x2a8   : > { %v2797_v37 = vmax.f32 %v2706_v19, 0.0  ;;  %3248 = vmatmul.msk.f32.gmra.mxu1 %vm2581_vm11, %v2551_v20  ;;  %v611_v20 = vadd.s32 96, %v3926_v35 }
 0x2a9   : > { %v4564_v19 = vpop.permute.xlu2 %1930 }
 0x2aa   : > { %3272 = vmatmul.msk.f32.gmra.mxu2 %vm559_vm1, %v2797_v37  ;;  %v719_v24 = vand.u32 15, %v611_v20  ;;  %v4603_v20 = vld [vmem:[#allocation2 + $0x110] sm:$0xff] }
 0x2ab   : > { %2440 = vrot.lane.b32.xlu1 %v2233_v43, %s3401_s16 }
 0x2ac   : > { %1938 = vrot.lane.b32.xlu0 %v4445_v33, %s3399_s14  ;;  %vm1027_vm8 = vcmp.gt.s32.totalorder %v719_v24, 0 }
 0x2ad   : > { %v1587_v39 = vpop.permute.xlu1 %1586  ;;  %v2708_v54 = vpop.f32.mrf.mxu1 }
 0x2ae   : > { %v2043_v52 = vpop.permute.xlu0 %2042  ;;  %v2709_v28 = vadd.f32 %v4489_v8, %v2708_v54  ;;  %v1502_v54 = vld [vmem:[#allocation2 + $0x108] sm:$0xff] }
 0x2af   : > { %1676 = vrot.lane.b32.xlu2 %v4547_v2, %s3398_s11 }
 0x2b0   : > { %v2798_v9 = vmax.f32 %v2709_v28, 0.0  ;;  %v1756_v28 = vsel %vm559_vm1, %v4547_v2, %v1587_v39 }
 0x2b1   : > { %v2307_v47 = vpop.permute.xlu2 %2306 }
 0x2b2   : > { %3273 = vmatmul.msk.f32.gmra.mxu2 %vm559_vm1, %v2798_v9  ;;  %v3340_v9 = vld [vmem:[#allocation2 + $0x67] sm:$0xff] }
 0x2b3   : > { %2050 = vrot.lane.b32.xlu1 %v4555_v53, %s3398_s11  ;;  %v1321_v25 = vsel %vm559_vm1, %v3340_v9, %v4074_v23 }
 0x2b4   : > { %2314 = vrot.lane.b32.xlu0 %v1780_v17, %s3400_s15  ;;  %v1354_v17 = vsel %vm1341_vm2, %v1321_v25, %v4102_v55 }
 0x2b5   : > { %v1685_v61 = vpop.permute.xlu1 %1684  ;;  %v2711_v16 = vpop.f32.mrf.mxu1 }
 0x2b6   : > { %v4561_v6 = vpop.permute.xlu0 %1670  ;;  %v2712_v27 = vadd.f32 %v4489_v8, %v2711_v16  ;;  %v1788_v60 = vsel %vm1341_vm2, %v1756_v28, %v1685_v61  ;;  %v1450_v61 = vsel %vm1027_vm8, %v1354_v17, 0.0  ;;  %v1853_v28 = vld [vmem:[#allocation2 + $0xd1] sm:$0xff] }
 0x2b7   : > { %1594 = vrot.lane.b32.xlu2 %v4415_v4, %s3399_s14  ;;  %v2519_v23 = vsel %vm2506_vm10, %v1450_v61, %v2307_v47  ;;  %v2114_v47 = vsel %vm559_vm1, %v4506_v32, %v4543_v3 }
 0x2b8   : > { %v2799_v58 = vmax.f32 %v2712_v27, 0.0  ;;  %v2146_v25 = vsel %vm1341_vm2, %v2114_v47, %v2043_v52  ;;  %v3341_v47 = vld [vmem:[#allocation2 + $0x6f] sm:$0xff] }
 0x2ba   : > { %3274 = vmatmul.msk.f32.gmra.mxu2 %vm559_vm1, %v2799_v58 }
 0x2bb   : > { %1678 = vrot.lane.b32.xlu1 %v4572_v15, %s3398_s11 }
 0x2bc   : > { %2442 = vrot.lane.b32.xlu0 %v2138_v1, %s3401_s16 }
 0x2bd   : > { %v4579_v37 = vpop.permute.xlu1 %1572 }
 0x2be   : > { %v4581_v43 = vpop.permute.xlu0 %1588 }
 0x2bf   : > { %1692 = vrot.lane.b32.xlu2 %v1502_v54, %s3398_s11 }
 0x2c3   : > { %1596 = vrot.lane.b32.xlu1 %v4534_v0, %s3399_s14  ;;  %v1862_v0 = vld [vmem:[#allocation2 + $0x119] sm:$0xff] }
 0x2c4   : > { %2330 = vrot.lane.b32.xlu0 %v1788_v60, %s3400_s15 }
 0x2c5   : > { %v2714_v16 = vpop.f32.mrf.mxu1  ;;  %v4594_v27 = vpop.permute.xlu1 %2028 }
 0x2c6   : > { %v2715_v39 = vadd.f32 %v4489_v8, %v2714_v16  ;;  %v4597_v58 = vpop.permute.xlu0 %1686 }
 0x2c7   : > { %1580 = vrot.lane.b32.xlu2 %v4495_v22, %s3399_s14 }
 0x2c8   : > { %v2800_v44 = vmax.f32 %v2715_v39, 0.0 }
 0x2c9   : > { %v2435_v1 = vpop.permute.xlu2 %2434 }
 0x2ca   : > { %3275 = vmatmul.msk.f32.gmra.mxu2 %vm559_vm1, %v2800_v44  ;;  %v2552_v55 = vsel %vm2539_vm9, %v2519_v23, %v2435_v1  ;;  %v1504_v1 = vld [vmem:[#allocation2 + $0x118] sm:$0xff] }
 0x2cb   : > { %1694 = vrot.lane.b32.xlu1 %v4603_v20, %s3398_s11  ;;  %3249 = vmatmul.msk.f32.gmra.mxu1 %vm2581_vm11, %v2552_v55  ;;  %v4629_v55 = vld [vmem:[#allocation2 + $0x111] sm:$0xff] }
 0x2cc   : > { %1680 = vrot.lane.b32.xlu0 %v4303_v29, %s3398_s11 }
 0x2cd   : > { %v1947_v24 = vpop.permute.xlu1 %1946 }
 0x2ce   : > { %v1673_v60 = vpop.permute.xlu0 %1672 }
 0x2cf   : > { %2036 = vrot.lane.b32.xlu2 %v1853_v28, %s3398_s11 }
 0x2d1   : > { %v1575_v9 = vpop.permute.xlu2 %1574 }
 0x2d3   : > { %2458 = vrot.lane.b32.xlu1 %v2146_v25, %s3401_s16  ;;  %v1322_v25 = vsel %vm559_vm1, %v3341_v47, %v4104_v63  ;;  %v1749_v47 = vsel %vm559_vm1, %v4157_v5, %v4579_v37  ;;  %v1750_v37 = vsel %vm559_vm1, %v4197_v59, %v1575_v9  ;;  %v613_v9 = vadd.s32 112, %v3926_v35 }
 0x2d4   : > { %1598 = vrot.lane.b32.xlu0 %v1502_v54, %s3399_s14 }
 0x2d5   : > { %v2045_v17 = vpop.permute.xlu1 %2044  ;;  %v2717_v16 = vpop.f32.mrf.mxu1 }
 0x2d6   : > { %v4618_v39 = vpop.permute.xlu0 %1590  ;;  %v2718_v61 = vadd.f32 %v4489_v8, %v2717_v16 }
 0x2d7   : > { %1954 = vrot.lane.b32.xlu2 %v4473_v46, %s3399_s14 }
 0x2d8   : > { %v2801_v44 = vmax.f32 %v2718_v61, 0.0 }
 0x2d9   : > { %v2309_v23 = vpop.permute.xlu2 %2308 }
 0x2da   : > { %3276 = vmatmul.msk.f32.gmra.mxu2 %vm559_vm1, %v2801_v44 }
 0x2db   : > { %1940 = vrot.lane.b32.xlu1 %v4506_v32, %s3399_s14  ;;  %v1355_v32 = vsel %vm1341_vm2, %v1322_v25, %v4167_v41  ;;  %v624_v41 = vadd.s32 200, %v3926_v35  ;;  %v616_v25 = vadd.s32 136, %v3926_v35 }
 0x2dc   : > { %1696 = vrot.lane.b32.xlu0 %v1504_v1, %s3398_s11  ;;  %v2520_v61 = vsel %vm2506_vm10, %v1355_v32, %v2309_v23 }
 0x2dd   : > { %v1933_v3 = vpop.permute.xlu1 %1932 }
 0x2de   : > { %v4627_v52 = vpop.permute.xlu0 %1688  ;;  %v2720_v54 = vpop.f32.mrf.mxu1 }
 0x2df   : > { %v2721_v16 = vadd.f32 %v4489_v8, %v2720_v54  ;;  %2052 = vrot.lane.b32.xlu2 %v4629_v55, %s3398_s11 }
 0x2e1   : > { %v2802_v44 = vmax.f32 %v2721_v16, 0.0  ;;  %v2437_v1 = vpop.permute.xlu2 %2436  ;;  %v810_v16 = vand.u32 15, %v624_v41  ;;  %v1757_v41 = vsel %vm559_vm1, %v4572_v15, %v4581_v43 }
 0x2e2   : > { %v2553_v46 = vsel %vm2539_vm9, %v2520_v61, %v2437_v1  ;;  %v754_v61 = vand.u32 15, %v616_v25 }
 0x2e3   : > { %3277 = vmatmul.msk.f32.gmra.mxu2 %vm559_vm1, %v2802_v44  ;;  %2038 = vrot.lane.b32.xlu1 %v4324_v48, %s3398_s11  ;;  %vm1821_vm12 = vcmp.lt.s32.totalorder %v810_v16, 15  ;;  %v2107_v44 = vsel %vm559_vm1, %v4147_v10, %v4564_v19  ;;  %v2108_v19 = vsel %vm559_vm1, %v4216_v42, %v1933_v3  ;;  %v1789_v16 = vsel %vm1341_vm2, %v1757_v41, %v4597_v58  ;;  %v3342_v3 = vld [vmem:[#allocation2 + $0x77] sm:$0xff] }
 0x2e4   : > { %2054 = vrot.lane.b32.xlu0 %v1862_v0, %s3398_s11  ;;  %3250 = vmatmul.msk.f32.gmra.mxu1 %vm2581_vm11, %v2553_v46  ;;  %v2115_v0 = vsel %vm559_vm1, %v1853_v28, %v1947_v24  ;;  %vm1813_vm13 = vcmp.lt.s32.totalorder %v754_v61, 15  ;;  %v618_v61 = vadd.s32 152, %v3926_v35  ;;  %v1758_v58 = vsel %vm559_vm1, %v4303_v29, %v4618_v39 }
 0x2e5   : > { %v2031_v63 = vpop.permute.xlu1 %2030  ;;  %v2147_v5 = vsel %vm1341_vm2, %v2115_v0, %v2045_v17 }
 0x2e6   : > { %v4645_v54 = vpop.permute.xlu0 %1576  ;;  %v2243_v24 = vsel %vm1821_vm12, %v2147_v5, 0.0 }
 0x2e7   : > { %1582 = vrot.lane.b32.xlu2 %v4547_v2, %s3399_s14  ;;  %v1781_v2 = vsel %vm1341_vm2, %v1749_v47, %v4561_v6  ;;  %v2139_v6 = vsel %vm1341_vm2, %v2107_v44, %v4594_v27  ;;  %v2140_v27 = vsel %vm1341_vm2, %v2108_v19, %v2031_v63  ;;  %v1323_v63 = vsel %vm559_vm1, %v3342_v3, %v4084_v7  ;;  %v4749_v3 = vld [vmem:[%s5150_s6] ss:$0 sm:$0xff] }
 0x2e8   : > { %v2235_v1 = vsel %vm1813_vm13, %v2139_v6, 0.0  ;;  %v1356_v43 = vsel %vm1341_vm2, %v1323_v63, %v4187_v18  ;;  %v768_v44 = vand.u32 15, %v618_v61 }
 0x2e9   : > { %v4650_v23 = vpop.permute.xlu2 %2046 }
 0x2ea   : > { %vm1815_vm15 = vcmp.lt.s32.totalorder %v768_v44, 15 }
 0x2eb   : > { %1956 = vrot.lane.b32.xlu1 %v4555_v53, %s3399_s14 }
 0x2ec   : > { %1942 = vrot.lane.b32.xlu0 %v1853_v28, %s3399_s14  ;;  %v1782_v28 = vsel %vm1341_vm2, %v1750_v37, %v1673_v60  ;;  %v733_v60 = vand.u32 15, %v613_v9  ;;  %v1790_v37 = vsel %vm1341_vm2, %v1758_v58, %v4627_v52  ;;  %v1505_v9 = vld [vmem:[#allocation2 + $0x120] sm:$0xff] }
 0x2ed   : > { %v4659_v46 = vpop.permute.xlu1 %1948 }
 0x2ee   : > { %v2033_v32 = vpop.permute.xlu0 %2032  ;;  %vm1029_vm14 = vcmp.gt.s32.totalorder %v733_v60, 0 }
 0x2ef   : > { %2316 = vrot.lane.b32.xlu2 %v1781_v2, %s3400_s15  ;;  %v1452_v7 = vsel %vm1029_vm14, %v1356_v43, 0.0 }
 0x2f1   : > { %v4668_v53 = vpop.permute.xlu2 %1674 }
 0x2f3   : > { %2460 = vrot.lane.b32.xlu1 %v2243_v24, %s3401_s16 }
 0x2f4   : > { %2318 = vrot.lane.b32.xlu0 %v1782_v28, %s3400_s15 }
 0x2f5   : > { %v1935_v17 = vpop.permute.xlu1 %1934 }
 0x2f6   : > { %v4678_v59 = vpop.permute.xlu0 %1950  ;;  %v2109_v18 = vsel %vm559_vm1, %v4222_v36, %v1935_v17 }
 0x2f7   : > { %2444 = vrot.lane.b32.xlu2 %v2235_v1, %s3401_s16 }
 0x2f9   : > { %v1593_v10 = vpop.permute.xlu2 %1592 }
 0x2fb   : > { %1682 = vrot.lane.b32.xlu1 %v4346_v13, %s3398_s11 }
 0x2fc   : > { %2446 = vrot.lane.b32.xlu0 %v2140_v27, %s3401_s16 }
 0x2fd   : > { %v2311_v47 = vpop.permute.xlu1 %2310  ;;  %v2723_v25 = vpop.f32.mrf.mxu1 }
 0x2fe   : > { %v4693_v0 = vpop.permute.xlu0 %2048  ;;  %v2724_v42 = vadd.f32 %v4489_v8, %v2723_v25  ;;  %v2521_v24 = vsel %vm2506_vm10, %v1452_v7, %v2311_v47 }
 0x2ff   : > { %2332 = vrot.lane.b32.xlu2 %v1789_v16, %s3400_s15 }
 0x300   : > { %v2803_v2 = vmax.f32 %v2724_v42, 0.0 }
 0x301   : > { %v1691_v5 = vpop.permute.xlu2 %1690 }
 0x302   : > { %3278 = vmatmul.msk.f32.gmra.mxu2 %vm559_vm1, %v2803_v2 }
 0x303   : > { %1600 = vrot.lane.b32.xlu1 %v4603_v20, %s3399_s14  ;;  %v2141_v20 = vsel %vm1341_vm2, %v2109_v18, %v2033_v32 }
 0x304   : > { %2334 = vrot.lane.b32.xlu0 %v1790_v37, %s3400_s15  ;;  %v2237_v17 = vsel %vm1815_vm15, %v2141_v20, 0.0  ;;  %v3344_v37 = vld [vmem:[%s3464_s10] sm:$0xff] }
 0x305   : > { %v2439_v6 = vpop.permute.xlu1 %2438  ;;  %v2726_v28 = vpop.f32.mrf.mxu1 }
 0x306   : > { %v1937_v29 = vpop.permute.xlu0 %1936  ;;  %v2727_v39 = vadd.f32 %v4489_v8, %v2726_v28  ;;  %v2554_v1 = vsel %vm2539_vm9, %v2521_v24, %v2439_v6  ;;  %v615_v24 = vadd.s32 128, %v3926_v35 }
 0x307   : > { %1584 = vrot.lane.b32.xlu2 %v4572_v15, %s3399_s14  ;;  %3251 = vmatmul.msk.f32.gmra.mxu1 %vm2581_vm11, %v2554_v1  ;;  %v2116_v15 = vsel %vm559_vm1, %v4324_v48, %v4659_v46  ;;  %v3343_v48 = vld [vmem:[#allocation2 + $0x7f] sm:$0xff]  ;;  %v1759_v46 = vsel %vm559_vm1, %v4346_v13, %v1593_v10  ;;  %v2110_v7 = vsel %vm559_vm1, %v4305_v50, %v1937_v29 }
 0x308   : > { %v2804_v52 = vmax.f32 %v2727_v39, 0.0  ;;  %v2148_v41 = vsel %vm1341_vm2, %v2116_v15, %v4650_v23  ;;  %v1791_v23 = vsel %vm1341_vm2, %v1759_v46, %v1691_v5  ;;  %v626_v39 = vadd.s32 216, %v3926_v35 }
 0x309   : > { %v1677_v36 = vpop.permute.xlu2 %1676  ;;  %v1751_v50 = vsel %vm559_vm1, %v4238_v38, %v4645_v54  ;;  %v3345_v38 = vld [vmem:[%s3464_s10 + $0x8] sm:$0xff] }
 0x30a   : > { %3279 = vmatmul.msk.f32.gmra.mxu2 %vm559_vm1, %v2804_v52  ;;  %v747_v52 = vand.u32 15, %v615_v24  ;;  %v824_v15 = vand.u32 15, %v626_v39  ;;  %v3346_v54 = vld [vmem:[#allocation2 + $0x87] sm:$0xff] }
 0x30b   : > { %1698 = vrot.lane.b32.xlu1 %v1505_v9, %s3398_s11  ;;  %v1783_v9 = vsel %vm1341_vm2, %v1751_v50, %v4668_v53  ;;  %v1325_v53 = vsel %vm559_vm1, %v3346_v54, %v4165_v62 }
 0x30c   : > { %2448 = vrot.lane.b32.xlu0 %v2237_v17, %s3401_s16  ;;  %vm1031_vm3 = vcmp.gt.s32.totalorder %v747_v52, 0  ;;  %vm1823_vm4 = vcmp.lt.s32.totalorder %v824_v15, 15 }
 0x30d   : > { %v1579_v19 = vpop.permute.xlu1 %1578 }
 0x30e   : > { %v2035_v27 = vpop.permute.xlu0 %2034  ;;  %v1752_v32 = vsel %vm559_vm1, %v4291_v21, %v1579_v19  ;;  %v1324_v21 = vsel %vm559_vm1, %v3343_v48, %v4155_v45  ;;  %v1863_v45 = vld [vmem:[#allocation2 + $0x121] sm:$0xff] }
 0x30f   : > { %2040 = vrot.lane.b32.xlu2 %v4384_v34, %s3398_s11  ;;  %v1784_v47 = vsel %vm1341_vm2, %v1752_v32, %v1677_v36  ;;  %v2142_v6 = vsel %vm1341_vm2, %v2110_v7, %v2035_v27 }
 0x311   : > { %v4730_v60 = vpop.permute.xlu2 %1594 }
 0x313   : > { %2462 = vrot.lane.b32.xlu1 %v2148_v41, %s3401_s16 }
 0x314   : > { %2322 = vrot.lane.b32.xlu0 %v1784_v47, %s3400_s15 }
 0x315   : > { %v2313_v25 = vpop.permute.xlu1 %2312 }
 0x316   : > { %v1953_v16 = vpop.permute.xlu0 %1952 }
 0x317   : > { %1958 = vrot.lane.b32.xlu2 %v4629_v55, %s3399_s14  ;;  %v1357_v55 = vsel %vm1341_vm2, %v1324_v21, %v4151_v49  ;;  %v2118_v29 = vsel %vm559_vm1, %v4311_v40, %v1953_v16  ;;  %v2117_v16 = vsel %vm559_vm1, %v4384_v34, %v4678_v59 }
 0x318   : > { %v2522_v63 = vsel %vm2506_vm10, %v1357_v55, %v2313_v25  ;;  %v1358_v25 = vsel %vm1341_vm2, %v1325_v53, %v4209_v31  ;;  %v2149_v21 = vsel %vm1341_vm2, %v2117_v16, %v4693_v0  ;;  %v5238_v53 = vld [vmem:[#allocation5_spill] sm:$0xff] }
 0x319   : > { %v4743_v42 = vpop.permute.xlu2 %1692  ;;  %v1454_v62 = vsel %vm1031_vm3, %v1358_v25, 0.0  ;;  %v2245_v55 = vsel %vm1823_vm4, %v2149_v21, 0.0 }
 0x31b   : > { %2336 = vrot.lane.b32.xlu1 %v1791_v23, %s3400_s15 }
 0x31d   : > { %v2948_v13 = vpop.f32.mrf.mxu2  ;;  %v2441_v10 = vpop.permute.xlu1 %2440 }
 0x31e   : > { %v2949_v2 = vadd.f32 %v4749_v3, %v2948_v13  ;;  %v4756_v61 = vpop.permute.xlu0 %1938  ;;  %v2729_v43 = vpop.f32.mrf.mxu1  ;;  %v2555_v5 = vsel %vm2539_vm9, %v2522_v63, %v2441_v10  ;;  %v3347_v13 = vld [vmem:[%s3464_s10 + $0x10] sm:$0xff] }
 0x31f   : > { %v2730_v58 = vadd.f32 %v4489_v8, %v2729_v43  ;;  %2056 = vrot.lane.b32.xlu2 %v1863_v45, %s3398_s11  ;;  %3252 = vmatmul.msk.f32.gmra.mxu1 %vm2581_vm11, %v2555_v5  ;;  %v620_v5 = vadd.s32 168, %v3926_v35 }
 0x320   : > { %v3044_v49 = vadd.f32 %v3344_v37, %v2949_v2  ;;  %v1760_v37 = vsel %vm559_vm1, %v4322_v11, %v4730_v60  ;;  %v623_v11 = vadd.s32 192, %v3926_v35 }
 0x321   : > { %v2805_v44 = vmax.f32 %v2730_v58, 0.0  ;;  %v1581_v18 = vpop.permute.xlu2 %1580 }
 0x322   : > { %v3076_v28 = vmax.f32 %v3044_v49, 0.0  ;;  %v1753_v46 = vsel %vm559_vm1, %v4330_v56, %v1581_v18  ;;  %v628_v56 = vadd.s32 232, %v3926_v35 }
 0x323   : > { %3280 = vmatmul.msk.f32.gmra.mxu2 %vm559_vm1, %v2805_v44  ;;  %2450 = vrot.lane.b32.xlu1 %v2142_v6, %s3401_s16  ;;  %v1792_v44 = vsel %vm1341_vm2, %v1760_v37, %v4743_v42  ;;  %v782_v6 = vand.u32 15, %v620_v5  ;;  %v2111_v42 = vsel %vm559_vm1, %v4367_v12, %v4756_v61 }
 0x324   : > { %3108 = vst.msk [vmem:[%s4768_s19] sm:$0xff] %vm317_vm0, %v3076_v28  ;;  %v838_v58 = vand.u32 15, %v628_v56  ;;  %v3348_v28 = vld [vmem:[%s3464_s10 + $0x18] sm:$0xff]  ;;  %v3351_v56 = vld [vmem:[#allocation2 + $0x8f] sm:$0xff] }
 0x325   : > { %v2951_v1 = vpop.f32.mrf.mxu2  ;;  %v2051_v20 = vpop.permute.xlu1 %2050  ;;  %vm4833_vm6 = vcmp.lt.s32.totalorder %v782_v6, 15 }
 0x326   : > { %v2952_v36 = vadd.f32 %v4749_v3, %v2951_v1  ;;  %v2150_v17 = vsel %vm1341_vm2, %v2118_v29, %v2051_v20  ;;  %v2315_v19 = vpop.permute.xlu0 %2314  ;;  %v2732_v27 = vpop.f32.mrf.mxu1  ;;  %vm1825_vm5 = vcmp.lt.s32.totalorder %v838_v58, 15  ;;  %v5240_v58 = vld [vmem:[#allocation22_spill] sm:$0xff] }
 0x327   : > { %v2733_v32 = vadd.f32 %v4489_v8, %v2732_v27  ;;  %2320 = vrot.lane.b32.xlu2 %v1783_v9, %s3400_s15  ;;  %2466 = vrot.lane.b32.xlu0 %v2150_v17, %s3401_s16  ;;  %v2523_v34 = vsel %vm2506_vm10, %v1454_v62, %v2315_v19  ;;  %v3349_v17 = vld [vmem:[#allocation2 + $0xc7] sm:$0xff]  ;;  %v5237_v19 = vld [vmem:[#allocation11_spill] sm:$0xff] }
 0x328   : > { %v3045_v40 = vadd.f32 %v3345_v38, %v2952_v36  ;;  %v803_v36 = vand.u32 15, %v623_v11  ;;  %v1333_v27 = vsel %vm559_vm1, %v3349_v17, %v5237_v19 }
 0x329   : > { %v2806_v41 = vmax.f32 %v2733_v32, 0.0  ;;  %v2037_v47 = vpop.permute.xlu2 %2036 }
 0x32a   : > { %v3077_v48 = vmax.f32 %v3045_v40, 0.0  ;;  %v2143_v52 = vsel %vm1341_vm2, %v2111_v42, %v2037_v47  ;;  %vm1039_vm7 = vcmp.gt.s32.totalorder %v803_v36, 0  ;;  %v3354_v36 = vld [vmem:[#allocation2 + $0xcf] sm:$0xff] }
 0x32b   : > { %3281 = vmatmul.msk.f32.gmra.mxu2 %vm559_vm1, %v2806_v41  ;;  %v2239_v15 = vsel %vm4833_vm6, %v2143_v52, 0.0  ;;  %v1366_v41 = vsel %vm1341_vm2, %v1333_v27, %v5238_v53 }
 0x32c   : > { %3109 = vst.msk [vmem:[%s4768_s19 + $0x8] sm:$0xff] %vm317_vm0, %v3077_v48  ;;  %v1462_v48 = vsel %vm1039_vm7, %v1366_v41, 0.0 }
 0x32d   : > { %v1679_v23 = vpop.permute.xlu1 %1678  ;;  %v2954_v31 = vpop.f32.mrf.mxu2 }
 0x32e   : > { %v1785_v59 = vsel %vm1341_vm2, %v1753_v46, %v1679_v23  ;;  %v2443_v45 = vpop.permute.xlu0 %2442  ;;  %v2955_v63 = vadd.f32 %v4749_v3, %v2954_v31 }
 0x32f   : > { %2464 = vrot.lane.b32.xlu2 %v2245_v55, %s3401_s16  ;;  %2324 = vrot.lane.b32.xlu1 %v1785_v59, %s3400_s15  ;;  %v2556_v0 = vsel %vm2539_vm9, %v2523_v34, %v2443_v45 }
 0x330   : > { %v3046_v10 = vadd.f32 %v3347_v13, %v2955_v63  ;;  %3253 = vmatmul.msk.f32.gmra.mxu1 %vm2581_vm11, %v2556_v0 }
 0x331   : > { %v1955_v2 = vpop.permute.xlu2 %1954 }
 0x332   : > { %v3078_v43 = vmax.f32 %v3046_v10, 0.0  ;;  %v2119_v50 = vsel %vm559_vm1, %v4401_v51, %v1955_v2  ;;  %v5239_v2 = vld [vmem:[#allocation39_spill] sm:$0xff] }
 0x334   : > { %3110 = vst.msk [vmem:[%s4768_s19 + $0x10] sm:$0xff] %vm317_vm0, %v3078_v43  ;;  %v1326_v43 = vsel %vm559_vm1, %v3351_v56, %v5239_v2 }
 0x335   : > { %v1597_v49 = vpop.permute.xlu1 %1596  ;;  %v2957_v7 = vpop.f32.mrf.mxu2  ;;  %v1359_v37 = vsel %vm1341_vm2, %v1326_v43, %v5240_v58  ;;  %v630_v58 = vadd.s32 248, %v3926_v35 }
 0x336   : > { %v2331_v18 = vpop.permute.xlu0 %2330  ;;  %v2958_v24 = vadd.f32 %v4749_v3, %v2957_v7  ;;  %v1761_v51 = vsel %vm559_vm1, %v4372_v30, %v1597_v49  ;;  %v3350_v30 = vld [vmem:[%s3464_s10 + $0x20] sm:$0xff]  ;;  %v3352_v49 = vld [vmem:[%s3464_s10 + $0x28] sm:$0xff] }
 0x337   : > { %2338 = vrot.lane.b32.xlu2 %v1792_v44, %s3400_s15  ;;  %v2531_v21 = vsel %vm2506_vm10, %v1462_v48, %v2331_v18 }
 0x338   : > { %v3047_v39 = vadd.f32 %v3348_v28, %v2958_v24 }
 0x339   : > { %v2053_v60 = vpop.permute.xlu2 %2052 }
 0x33a   : > { %v3079_v29 = vmax.f32 %v3047_v39, 0.0  ;;  %v2151_v1 = vsel %vm1341_vm2, %v2119_v50, %v2053_v60 }
 0x33b   : > { %v2247_v9 = vsel %vm1825_vm5, %v2151_v1, 0.0 }
 0x33c   : > { %3111 = vst.msk [vmem:[%s4768_s19 + $0x18] sm:$0xff] %vm317_vm0, %v3079_v29  ;;  %2468 = vrot.lane.b32.xlu1 %v2247_v9, %s3401_s16  ;;  %v3353_v9 = vld [vmem:[%s3464_s10 + $0x30] sm:$0xff] }
 0x33d   : > { %v1695_v12 = vpop.permute.xlu1 %1694  ;;  %v2960_v61 = vpop.f32.mrf.mxu2 }
 0x33e   : > { %v1793_v32 = vsel %vm1341_vm2, %v1761_v51, %v1695_v12  ;;  %v1681_v38 = vpop.permute.xlu0 %1680  ;;  %v2961_v40 = vadd.f32 %v4749_v3, %v2960_v61  ;;  %v622_v51 = vadd.s32 184, %v3926_v35  ;;  %v5241_v12 = vld [vmem:[#allocation20_spill] sm:$0xff] }
 0x33f   : > { %2340 = vrot.lane.b32.xlu0 %v1793_v32, %s3400_s15  ;;  %2452 = vrot.lane.b32.xlu2 %v2239_v15, %s3401_s16  ;;  %v1334_v61 = vsel %vm559_vm1, %v3354_v36, %v5241_v12  ;;  %v5242_v32 = vld [vmem:[#allocation9_spill] sm:$0xff]  ;;  %v5250_v12 = vld [vmem:[#allocation18_spill] sm:$0xff] }
 0x340   : > { %v3048_v54 = vadd.f32 %v3350_v30, %v2961_v40  ;;  %v796_v30 = vand.u32 15, %v622_v51  ;;  %v5249_v51 = vld [vmem:[#allocation6_spill] sm:$0xff] }
 0x341   : > { %v1583_v47 = vpop.permute.xlu2 %1582 }
 0x342   : > { %v3080_v25 = vmax.f32 %v3048_v54, 0.0  ;;  %v1754_v16 = vsel %vm559_vm1, %v4388_v14, %v1583_v47  ;;  %vm1819_vm8 = vcmp.lt.s32.totalorder %v796_v30, 15 }
 0x343   : > { %v1786_v31 = vsel %vm1341_vm2, %v1754_v16, %v1681_v38  ;;  %v1367_v38 = vsel %vm1341_vm2, %v1334_v61, %v5242_v32 }
 0x344   : > { %3112 = vst.msk [vmem:[%s4768_s19 + $0x20] sm:$0xff] %vm317_vm0, %v3080_v25 }
 0x345   : > { %v2459_v62 = vpop.permute.xlu1 %2458 }
 0x346   : > { %v2564_v46 = vsel %vm2539_vm9, %v2531_v21, %v2459_v62  ;;  %v1599_v23 = vpop.permute.xlu0 %1598  ;;  %v3355_v21 = vld [vmem:[#allocation2 + $0x97] sm:$0xff] }
 0x347   : > { %3261 = vmatmul.msk.f32.vlgmr.msrb.gmra.mxu3 %vm2581_vm11, %v2564_v46  ;;  %2326 = vrot.lane.b32.xlu2 %v1786_v31, %s3400_s15  ;;  %v1762_v0 = vsel %vm559_vm1, %v4415_v4, %v1599_v23  ;;  %v5243_v62 = vld [vmem:[#allocation40_spill] sm:$0xff] }
 0x348   : > { %v2735_v55 = vpop.f32.mrf.mxu1  ;;  %v1327_v46 = vsel %vm559_vm1, %v3355_v21, %v5243_v62  ;;  %v3356_v31 = vld [vmem:[%s3464_s10 + $0x38] sm:$0xff] }
 0x349   : > { %v2736_v34 = vadd.f32 %v4489_v8, %v2735_v55  ;;  %v2317_v14 = vpop.permute.xlu2 %2316  ;;  %v3360_v21 = vld [vmem:[#allocation2 + $0xdf] sm:$0xff] }
 0x34a   : > { %v2524_v44 = vsel %vm2506_vm10, %v1359_v37, %v2317_v14  ;;  %v5244_v14 = vld [vmem:[#allocation12_spill] sm:$0xff] }
 0x34b   : > { %v2807_v59 = vmax.f32 %v2736_v34, 0.0  ;;  %v5251_v62 = vld [vmem:[#allocation8_spill] sm:$0xff] }
 0x34d   : > { %v2963_v45 = vpop.f32.mrf.mxu2  ;;  %v1941_v63 = vpop.permute.xlu1 %1940  ;;  %3282 = vmatmul.msk.f32.gmra.mxu2 %vm559_vm1, %v2807_v59  ;;  %v1360_v59 = vsel %vm1341_vm2, %v1327_v46, %v5244_v14  ;;  %v1336_v46 = vsel %vm559_vm1, %v3360_v21, %v5251_v62  ;;  %v5252_v14 = vld [vmem:[#allocation17_spill] sm:$0xff] }
 0x34e   : > { %v2964_v13 = vadd.f32 %v4749_v3, %v2963_v45  ;;  %v1697_v10 = vpop.permute.xlu0 %1696  ;;  %v2112_v6 = vsel %vm559_vm1, %v4424_v57, %v1941_v63 }
 0x34f   : > { %v1794_v5 = vsel %vm1341_vm2, %v1762_v0, %v1697_v10 }
 0x350   : > { %v3049_v7 = vadd.f32 %v3352_v49, %v2964_v13  ;;  %2342 = vrot.lane.b32.xlu1 %v1794_v5, %s3400_s15  ;;  %v852_v49 = vand.u32 15, %v630_v58  ;;  %v3362_v58 = vld [vmem:[#allocation2 + $0xe7] sm:$0xff] }
 0x351   : > { %v2445_v18 = vpop.permute.xlu2 %2444 }
 0x352   : > { %v3081_v4 = vmax.f32 %v3049_v7, 0.0  ;;  %v2557_v24 = vsel %vm2539_vm9, %v2524_v44, %v2445_v18  ;;  %vm1827_vm13 = vcmp.lt.s32.totalorder %v852_v49, 15  ;;  %v5245_v44 = vld [vmem:[#allocation32_spill] sm:$0xff] }
 0x353   : > { %3254 = vmatmul.msk.f32.gmra.mxu1 %vm2581_vm11, %v2557_v24 }
 0x354   : > { %3113 = vst.msk [vmem:[%s4768_s19 + $0x28] sm:$0xff] %vm317_vm0, %v3081_v4  ;;  %v625_v4 = vadd.s32 208, %v3926_v35 }
 0x355   : > { %v2039_v28 = vpop.permute.xlu1 %2038 }
 0x356   : > { %v2144_v39 = vsel %vm1341_vm2, %v2112_v6, %v2039_v28  ;;  %v2055_v50 = vpop.permute.xlu0 %2054 }
 0x357   : > { %2454 = vrot.lane.b32.xlu0 %v2144_v39, %s3401_s16  ;;  %v5246_v39 = vld [vmem:[#allocation21_spill] sm:$0xff] }
 0x359   : > { %v2333_v11 = vpop.permute.xlu2 %2332 }
 0x35a   : > { %v2532_v54 = vsel %vm2506_vm10, %v1367_v38, %v2333_v11  ;;  %v817_v11 = vand.u32 15, %v625_v4 }
 0x35c   : > { %vm1041_vm14 = vcmp.gt.s32.totalorder %v817_v11, 0 }
 0x35d   : > { %v1957_v60 = vpop.permute.xlu1 %1956  ;;  %v2966_v42 = vpop.f32.mrf.mxu2 }
 0x35e   : > { %v2120_v29 = vsel %vm559_vm1, %v4478_v26, %v1957_v60  ;;  %v1943_v1 = vpop.permute.xlu0 %1942  ;;  %v2967_v20 = vadd.f32 %v4749_v3, %v2966_v42  ;;  %v617_v26 = vadd.s32 144, %v3926_v35  ;;  %v3357_v42 = vld [vmem:[#allocation2 + $0xd7] sm:$0xff] }
 0x35f   : > { %v2152_v52 = vsel %vm1341_vm2, %v2120_v29, %v2055_v50  ;;  %v2113_v23 = vsel %vm559_vm1, %v4445_v33, %v1943_v1  ;;  %v5247_v29 = vld [vmem:[#allocation4_spill] sm:$0xff] }
 0x360   : > { %v3050_v57 = vadd.f32 %v3353_v9, %v2967_v20  ;;  %2470 = vrot.lane.b32.xlu2 %v2152_v52, %s3401_s16  ;;  %v761_v41 = vand.u32 15, %v617_v26  ;;  %v1335_v1 = vsel %vm559_vm1, %v3357_v42, %v5247_v29  ;;  %v3358_v52 = vld [vmem:[#allocation2 + $0x9f] sm:$0xff]  ;;  %v5248_v9 = vld [vmem:[#allocation7_spill] sm:$0xff] }
 0x361   : > { %v2738_v17 = vpop.f32.mrf.mxu1  ;;  %v1585_v19 = vpop.permute.xlu2 %1584  ;;  %v1368_v61 = vsel %vm1341_vm2, %v1335_v1, %v5250_v12 }
 0x362   : > { %v3082_v27 = vmax.f32 %v3050_v57, 0.0  ;;  %v2739_v15 = vadd.f32 %v4489_v8, %v2738_v17  ;;  %vm1033_vm12 = vcmp.gt.s32.totalorder %v761_v41, 0  ;;  %v1755_v10 = vsel %vm559_vm1, %v4495_v22, %v1585_v19 }
 0x363   : > { %v1456_v13 = vsel %vm1033_vm12, %v1360_v59, 0.0  ;;  %v1328_v57 = vsel %vm559_vm1, %v3358_v52, %v5248_v9  ;;  %v1369_v59 = vsel %vm1341_vm2, %v1336_v46, %v5252_v14  ;;  %v5256_v9 = vld [vmem:[#allocation14_spill] sm:$0xff]  ;;  %v3367_v14 = vld [vmem:[#allocation2 + $0xf7] sm:$0xff] }
 0x364   : > { %3114 = vst.msk [vmem:[%s4768_s19 + $0x30] sm:$0xff] %vm317_vm0, %v3082_v27  ;;  %v2808_v40 = vmax.f32 %v2739_v15, 0.0  ;;  %v1361_v36 = vsel %vm1341_vm2, %v1328_v57, %v5249_v51  ;;  %v1464_v15 = vsel %vm1041_vm14, %v1368_v61, 0.0  ;;  %v3363_v61 = vld [vmem:[%s3464_s10 + $0x50] sm:$0xff] }
 0x365   : > { %v2461_v53 = vpop.permute.xlu1 %2460 }
 0x366   : > { %v2319_v47 = vpop.permute.xlu0 %2318  ;;  %v2969_v25 = vpop.f32.mrf.mxu2  ;;  %3283 = vmatmul.msk.f32.gmra.mxu2 %vm559_vm1, %v2808_v40  ;;  %v2565_v16 = vsel %vm2539_vm9, %v2532_v54, %v2461_v53 }
 0x367   : > { %v2970_v48 = vadd.f32 %v4749_v3, %v2969_v25  ;;  %3262 = vmatmul.msk.f32.gmra.mxu3 %vm2581_vm11, %v2565_v16  ;;  %v2525_v56 = vsel %vm2506_vm10, %v1456_v13, %v2319_v47  ;;  %v3359_v25 = vld [vmem:[%s3464_s10 + $0x40] sm:$0xff] }
 0x369   : > { %v3051_v55 = vadd.f32 %v3356_v31, %v2970_v48  ;;  %v2041_v34 = vpop.permute.xlu2 %2040  ;;  %v619_v48 = vadd.s32 160, %v3926_v35 }
 0x36a   : > { %v2145_v45 = vsel %vm1341_vm2, %v2113_v23, %v2041_v34 }
 0x36b   : > { %v3083_v63 = vmax.f32 %v3051_v55, 0.0  ;;  %v2241_v0 = vsel %vm1819_vm8, %v2145_v45, 0.0  ;;  %v627_v55 = vadd.s32 224, %v3926_v35  ;;  %v775_v34 = vand.u32 15, %v619_v48 }
 0x36c   : > { %2456 = vrot.lane.b32.xlu1 %v2241_v0, %s3401_s16 }
 0x36d   : > { %3115 = vst.msk [vmem:[%s4768_s19 + $0x38] sm:$0xff] %vm317_vm0, %v3083_v63  ;;  %v1683_v33 = vpop.permute.xlu1 %1682  ;;  %vm1035_vm15 = vcmp.gt.s32.totalorder %v775_v34, 0  ;;  %v621_v34 = vadd.s32 176, %v3926_v35 }
 0x36e   : > { %v1787_v2 = vsel %vm1341_vm2, %v1755_v10, %v1683_v33  ;;  %v2447_v43 = vpop.permute.xlu0 %2446  ;;  %v3361_v33 = vld [vmem:[%s3464_s10 + $0x48] sm:$0xff] }
 0x36f   : > { %2328 = vrot.lane.b32.xlu0 %v1787_v2, %s3400_s15  ;;  %v2558_v5 = vsel %vm2539_vm9, %v2525_v56, %v2447_v43  ;;  %v831_v2 = vand.u32 15, %v627_v55 }
 0x370   : > { %3255 = vmatmul.msk.f32.gmra.mxu1 %vm2581_vm11, %v2558_v5 }
 0x371   : > { %v1959_v37 = vpop.permute.xlu2 %1958  ;;  %vm1043_vm3 = vcmp.gt.s32.totalorder %v831_v2, 0 }
 0x372   : > { %v2121_v18 = vsel %vm559_vm1, %v5245_v44, %v1959_v37  ;;  %v5253_v37 = vld [vmem:[#allocation16_spill] sm:$0xff]  ;;  %v5255_v44 = vld [vmem:[#allocation27_spill] sm:$0xff] }
 0x373   : > { %v1337_v49 = vsel %vm559_vm1, %v3362_v58, %v5253_v37 }
 0x375   : > { %v1601_v7 = vpop.permute.xlu1 %1600 }
 0x376   : > { %v2335_v22 = vpop.permute.xlu0 %2334  ;;  %v1763_v50 = vsel %vm559_vm1, %v5246_v39, %v1601_v7  ;;  %v5254_v7 = vld [vmem:[#allocation13_spill] sm:$0xff] }
 0x377   : > { %v2533_v38 = vsel %vm2506_vm10, %v1464_v15, %v2335_v22  ;;  %v1458_v22 = vsel %vm1035_vm15, %v5254_v7, 0.0 }
 0x379   : > { %v2057_v24 = vpop.permute.xlu2 %2056 }
 0x37a   : > { %v2153_v6 = vsel %vm1341_vm2, %v2121_v18, %v2057_v24  ;;  %v1370_v18 = vsel %vm1341_vm2, %v1337_v49, %v5255_v44 }
 0x37b   : > { %v2249_v28 = vsel %vm1827_vm13, %v2153_v6, 0.0  ;;  %v1466_v39 = vsel %vm1043_vm3, %v1370_v18, 0.0 }
 0x37c   : > { %2472 = vrot.lane.b32.xlu0 %v2249_v28, %s3401_s16 }
 0x37d   : > { %v1699_v60 = vpop.permute.xlu1 %1698 }
 0x37e   : > { %v1795_v20 = vsel %vm1341_vm2, %v1763_v50, %v1699_v60  ;;  %v2449_v19 = vpop.permute.xlu0 %2448 }
 0x37f   : > { %2344 = vrot.lane.b32.xlu2 %v1795_v20, %s3400_s15 }
 0x381   : > { %v2321_v17 = vpop.permute.xlu2 %2320 }
 0x382   : > { %v2526_v26 = vsel %vm2506_vm10, %v1361_v36, %v2321_v17 }
 0x383   : > { %v2559_v27 = vsel %vm2539_vm9, %v2526_v26, %v2449_v19  ;;  %v4989_v26 = vld [vmem:[%s5148_s4] ss:$0 sm:$0xff] }
 0x384   : > { %v2741_v32 = vpop.f32.mrf.mxu1  ;;  %3256 = vmatmul.msk.f32.gmra.mxu1 %vm2581_vm11, %v2559_v27 }
 0x385   : > { %v2742_v40 = vadd.f32 %v4489_v8, %v2741_v32  ;;  %v2463_v30 = vpop.permute.xlu1 %2462  ;;  %v2972_v54 = vpop.f32.mrf.mxu2 }
 0x386   : > { %v2973_v53 = vadd.f32 %v4749_v3, %v2972_v54  ;;  %v2566_v41 = vsel %vm2539_vm9, %v2533_v38, %v2463_v30  ;;  %v2323_v43 = vpop.permute.xlu0 %2322  ;;  %v3365_v38 = vld [vmem:[#allocation2 + $0xef] sm:$0xff] }
 0x387   : > { %v2809_v47 = vmax.f32 %v2742_v40, 0.0  ;;  %3263 = vmatmul.msk.f32.gmra.mxu3 %vm2581_vm11, %v2566_v41  ;;  %v2527_v4 = vsel %vm2506_vm10, %v1458_v22, %v2323_v43  ;;  %v5257_v40 = vld [vmem:[#allocation15_spill] sm:$0xff] }
 0x388   : > { %v3052_v16 = vadd.f32 %v3359_v25, %v2973_v53  ;;  %v1338_v30 = vsel %vm559_vm1, %v3365_v38, %v5257_v40  ;;  %v5258_v53 = vld [vmem:[#allocation35_spill] sm:$0xff] }
 0x389   : > { %3284 = vmatmul.msk.f32.gmra.mxu2 %vm559_vm1, %v2809_v47  ;;  %v2465_v31 = vpop.permute.xlu2 %2464  ;;  %v1371_v41 = vsel %vm1341_vm2, %v1338_v30, %v5258_v53  ;;  %v3366_v47 = vld [vmem:[%s3464_s10 + $0x58] sm:$0xff] }
 0x38a   : > { %v3084_v23 = vmax.f32 %v3052_v16, 0.0 }
 0x38c   : > { %3116 = vst.msk [vmem:[%s4768_s19 + $0x40] sm:$0xff] %vm317_vm0, %v3084_v23  ;;  %v629_v23 = vadd.s32 240, %v3926_v35  ;;  %v5261_v35 = vld [vmem:[#allocation24_spill] sm:$0xff] }
 0x38d   : > { %v2337_v45 = vpop.permute.xlu1 %2336  ;;  %v2975_v63 = vpop.f32.mrf.mxu2 }
 0x38e   : > { %v2534_v0 = vsel %vm2506_vm10, %v1369_v59, %v2337_v45  ;;  %v2976_v13 = vadd.f32 %v4749_v3, %v2975_v63  ;;  %v5259_v59 = vld [vmem:[#allocation25_spill] sm:$0xff]  ;;  %v5260_v63 = vld [vmem:[#allocation31_spill] sm:$0xff] }
 0x38f   : > { %v2567_v10 = vsel %vm2539_vm9, %v2534_v0, %v2465_v31  ;;  %v845_v31 = vand.u32 15, %v629_v23  ;;  %v1339_v45 = vsel %vm559_vm1, %v3367_v14, %v5259_v59  ;;  %v3371_v23 = vld [vmem:[%s3464_s10 + $0x70] sm:$0xff] }
 0x390   : > { %v3053_v56 = vadd.f32 %v3361_v33, %v2976_v13  ;;  %3264 = vmatmul.msk.f32.gmra.mxu3 %vm2581_vm11, %v2567_v10  ;;  %v1372_v0 = vsel %vm1341_vm2, %v1339_v45, %v5260_v63  ;;  %v789_v13 = vand.u32 15, %v621_v34 }
 0x391   : > { %v2339_v6 = vpop.permute.xlu2 %2338  ;;  %vm1045_vm4 = vcmp.gt.s32.totalorder %v845_v31, 0 }
 0x392   : > { %v3085_v5 = vmax.f32 %v3053_v56, 0.0  ;;  %v2535_v50 = vsel %vm2506_vm10, %v1466_v39, %v2339_v6  ;;  %v1468_v10 = vsel %vm1045_vm4, %v1372_v0, 0.0  ;;  %vm1037_vm5 = vcmp.gt.s32.totalorder %v789_v13, 0 }
 0x394   : > { %3117 = vst.msk [vmem:[%s4768_s19 + $0x48] sm:$0xff] %vm317_vm0, %v3085_v5  ;;  %v1460_v5 = vsel %vm1037_vm5, %v5261_v35, 0.0 }
 0x395   : > { %v2451_v24 = vpop.permute.xlu1 %2450 }
 0x396   : > { %v2560_v28 = vsel %vm2539_vm9, %v2527_v4, %v2451_v24  ;;  %v3368_v24 = vld [vmem:[%s3464_s10 + $0x60] sm:$0xff] }
 0x397   : > { %3257 = vmatmul.msk.f32.gmra.mxu1 %vm2581_vm11, %v2560_v28 }
 0x399   : > { %v2467_v11 = vpop.permute.xlu0 %2466  ;;  %v2453_v52 = vpop.permute.xlu2 %2452 }
 0x39a   : > { %v2568_v60 = vsel %vm2539_vm9, %v2535_v50, %v2467_v11  ;;  %v5262_v11 = vld [vmem:[#allocation10_spill] sm:$0xff] }
 0x39b   : > { %3265 = vmatmul.msk.f32.gmra.mxu3 %vm2581_vm11, %v2568_v60 }
 0x39c   : > { %v2744_v42 = vpop.f32.mrf.mxu1 }
 0x39d   : > { %v2745_v29 = vadd.f32 %v4489_v8, %v2744_v42 }
 0x39f   : > { %v2810_v1 = vmax.f32 %v2745_v29, 0.0 }
 0x3a1   : > { %v2325_v20 = vpop.permute.xlu1 %2324  ;;  %3285 = vmatmul.msk.f32.gmra.mxu2 %vm559_vm1, %v2810_v1  ;;  %v2327_v55 = vpop.permute.xlu2 %2326 }
 0x3a2   : > { %v2528_v57 = vsel %vm2506_vm10, %v5256_v9, %v2325_v20  ;;  %v2529_v58 = vsel %vm2506_vm10, %v1460_v5, %v2327_v55  ;;  %v3369_v20 = vld [vmem:[#allocation2 + $0xff] sm:$0xff] }
 0x3a3   : > { %v2561_v51 = vsel %vm2539_vm9, %v2528_v57, %v2453_v52  ;;  %v5263_v52 = vld [vmem:[#allocation33_spill] sm:$0xff] }
 0x3a4   : > { %3258 = vmatmul.msk.f32.gmra.mxu1 %vm2581_vm11, %v2561_v51  ;;  %v1340_v9 = vsel %vm559_vm1, %v3369_v20, %v5263_v52 }
 0x3a6   : > { %v2978_v36 = vpop.f32.mrf.mxu2 }
 0x3a7   : > { %v2979_v12 = vadd.f32 %v4749_v3, %v2978_v36  ;;  %v3370_v36 = vld [vmem:[%s3464_s10 + $0x68] sm:$0xff] }
 0x3a9   : > { %v3054_v17 = vadd.f32 %v3363_v61, %v2979_v12  ;;  %v5264_v61 = vld [vmem:[#allocation3_spill] sm:$0xff] }
 0x3ab   : > { %v3086_v19 = vmax.f32 %v3054_v17, 0.0  ;;  %v1373_v17 = vsel %vm1341_vm2, %v1340_v9, %v5264_v61  ;;  %v3374_v9 = vld [vmem:[%s3464_s10 + $0x88] sm:$0xff] }
 0x3ad   : > { %3118 = vst.msk [vmem:[%s4768_s19 + $0x50] sm:$0xff] %vm317_vm0, %v3086_v19  ;;  %v2747_v8 = vpop.f32.mrf.mxu1 }
 0x3ae   : > { %v2748_v27 = vadd.f32 %v4989_v26, %v2747_v8  ;;  %v2981_v15 = vpop.f32.mrf.mxu2  ;;  %v2469_v48 = vpop.permute.xlu1 %2468 }
 0x3af   : > { %v2982_v32 = vadd.f32 %v4749_v3, %v2981_v15 }
 0x3b0   : > { %v2811_v54 = vmax.f32 %v2748_v27, 0.0 }
 0x3b1   : > { %v3055_v25 = vadd.f32 %v3366_v47, %v2982_v32  ;;  %v2341_v16 = vpop.permute.xlu0 %2340 }
 0x3b2   : > { %v2536_v21 = vsel %vm2506_vm10, %v1371_v41, %v2341_v16  ;;  %3286 = vmatmul.msk.f32.gmra.mxu2 %vm559_vm1, %v2811_v54 }
 0x3b3   : > { %v3087_v62 = vmax.f32 %v3055_v25, 0.0  ;;  %v2569_v46 = vsel %vm2539_vm9, %v2536_v21, %v2469_v48 }
 0x3b4   : > { %3266 = vmatmul.msk.f32.gmra.mxu3 %vm2581_vm11, %v2569_v46 }
 0x3b5   : > { %3119 = vst.msk [vmem:[%s4768_s19 + $0x58] sm:$0xff] %vm317_vm0, %v3087_v62 }
 0x3ba   : > { %v2471_v56 = vpop.permute.xlu2 %2470 }
 0x3c2   : > { %v2343_v33 = vpop.permute.xlu1 %2342 }
 0x3c3   : > { %v2537_v2 = vsel %vm2506_vm10, %v1468_v10, %v2343_v33 }
 0x3c4   : > { %v2570_v43 = vsel %vm2539_vm9, %v2537_v2, %v2471_v56 }
 0x3c5   : > { %3267 = vmatmul.msk.f32.gmra.mxu3 %vm2581_vm11, %v2570_v43 }
 0x3c9   : > { %v2455_v37 = vpop.permute.xlu0 %2454 }
 0x3ca   : > { %v2562_v49 = vsel %vm2539_vm9, %v2529_v58, %v2455_v37  ;;  %v5027_v29 = vpop.f32.mrf.mxu3  ;;  %v3372_v58 = vld [vmem:[%s3464_s10 + $0x78] sm:$0xff] }
 0x3cb   : > { %3259 = vmatmul.msk.f32.gmra.mxu1 %vm2581_vm11, %v2562_v49 }
 0x3d0   : > { %v2750_v7 = vpop.f32.mrf.mxu1  ;;  %v2984_v22 = vpop.f32.mrf.mxu2 }
 0x3d1   : > { %v2751_v44 = vadd.f32 %v4989_v26, %v2750_v7  ;;  %v2985_v18 = vadd.f32 %v4749_v3, %v2984_v22 }
 0x3d3   : > { %v2812_v4 = vmax.f32 %v2751_v44, 0.0  ;;  %v3056_v6 = vadd.f32 %v3368_v24, %v2985_v18  ;;  %v3373_v18 = vld [vmem:[%s3464_s10 + $0x80] sm:$0xff] }
 0x3d5   : > { %v3088_v28 = vmax.f32 %v3056_v6, 0.0  ;;  %3287 = vmatmul.msk.f32.gmra.mxu2 %vm559_vm1, %v2812_v4 }
 0x3d7   : > { %3120 = vst.msk [vmem:[%s4768_s19 + $0x60] sm:$0xff] %vm317_vm0, %v3088_v28 }
 0x3d9   : > { %v2345_v51 = vpop.permute.xlu2 %2344 }
 0x3da   : > { %v2538_v8 = vsel %vm2506_vm10, %v1373_v17, %v2345_v51  ;;  %v2772_v17 = vadd.f32 %v4989_v26, %v5027_v29 }
 0x3de   : > { %v2457_v50 = vpop.permute.xlu1 %2456 }
 0x3e1   : > { %v2329_v39 = vpop.permute.xlu0 %2328 }
 0x3e2   : > { %v2530_v60 = vsel %vm2506_vm10, %v5262_v11, %v2329_v39 }
 0x3e3   : > { %v2563_v42 = vsel %vm2539_vm9, %v2530_v60, %v2457_v50 }
 0x3e4   : > { %3260 = vmatmul.msk.f32.gmra.mxu1 %vm2581_vm11, %v2563_v42 }
 0x3e9   : > { %v2987_v1 = vpop.f32.mrf.mxu2 }
 0x3ea   : > { %v2988_v57 = vadd.f32 %v4749_v3, %v2987_v1  ;;  %v2774_v38 = vpop.f32.mrf.mxu3 }
 0x3eb   : > { %v2775_v54 = vadd.f32 %v4989_v26, %v2774_v38 }
 0x3ec   : > { %v3057_v12 = vadd.f32 %v3370_v36, %v2988_v57 }
 0x3ed   : > { %v2753_v19 = vpop.f32.mrf.mxu1  ;;  %v2820_v53 = vmax.f32 %v2775_v54, 0.0 }
 0x3ee   : > { %v3089_v27 = vmax.f32 %v3057_v12, 0.0  ;;  %v2754_v15 = vadd.f32 %v4989_v26, %v2753_v19  ;;  %v2473_v32 = vpop.permute.xlu0 %2472  ;;  %v2819_v19 = vmax.f32 %v2772_v17, 0.0 }
 0x3ef   : > { %v2571_v40 = vsel %vm2539_vm9, %v2538_v8, %v2473_v32 }
 0x3f0   : > { %3121 = vst.msk [vmem:[%s4768_s19 + $0x68] sm:$0xff] %vm317_vm0, %v3089_v27  ;;  %v2813_v30 = vmax.f32 %v2754_v15, 0.0  ;;  %3268 = vmatmul.msk.f32.gmra.mxu3 %vm2581_vm11, %v2571_v40  ;;  %v3375_v40 = vld [vmem:[%s3464_s10 + $0x90] sm:$0xff] }
 0x3f2   : > { %3288 = vmatmul.msk.f32.gmra.mxu2 %vm559_vm1, %v2813_v30 }
 0x3f8   : > { %3295 = vmatmul.msk.f32.vlgmr.msra.gmra.mxu3 %vm559_vm1, %v2820_v53 }
 0x401   : > { %v2756_v41 = vpop.f32.mrf.mxu1 }
 0x402   : > { %v2757_v47 = vadd.f32 %v4989_v26, %v2756_v41  ;;  %v3376_v41 = vld [vmem:[%s3464_s10 + $0xc8] sm:$0xff] }
 0x404   : > { %v2814_v25 = vmax.f32 %v2757_v47, 0.0 }
 0x406   : > { %3289 = vmatmul.msk.f32.gmra.mxu2 %vm559_vm1, %v2814_v25 }
 0x40a   : > { %v2777_v16 = vpop.f32.mrf.mxu3 }
 0x40b   : > { %v2778_v48 = vadd.f32 %v4989_v26, %v2777_v16 }
 0x40c   : > { %v2990_v21 = vpop.f32.mrf.mxu2 }
 0x40d   : > { %v2821_v62 = vmax.f32 %v2778_v48, 0.0  ;;  %v2991_v46 = vadd.f32 %v4749_v3, %v2990_v21  ;;  %v3377_v48 = vld [vmem:[%s3464_s10 + $0x98] sm:$0xff] }
 0x40f   : > { %v3058_v31 = vadd.f32 %v3371_v23, %v2991_v46  ;;  %3296 = vmatmul.msk.f32.gmra.mxu3 %vm559_vm1, %v2821_v62 }
 0x411   : > { %v3090_v55 = vmax.f32 %v3058_v31, 0.0  ;;  %v3378_v31 = vld [vmem:[%s3464_s10 + $0xd0] sm:$0xff] }
 0x413   : > { %3122 = vst.msk [vmem:[%s4768_s19 + $0x70] sm:$0xff] %vm317_vm0, %v3090_v55  ;;  %v2780_v34 = vpop.f32.mrf.mxu3 }
 0x414   : > { %v2781_v14 = vadd.f32 %v4989_v26, %v2780_v34  ;;  %v2759_v59 = vpop.f32.mrf.mxu1 }
 0x415   : > { %v2760_v45 = vadd.f32 %v4989_v26, %v2759_v59 }
 0x416   : > { %v2822_v63 = vmax.f32 %v2781_v14, 0.0 }
 0x417   : > { %v2815_v0 = vmax.f32 %v2760_v45, 0.0 }
 0x418   : > { %3297 = vmatmul.msk.f32.gmra.mxu3 %vm559_vm1, %v2822_v63 }
 0x419   : > { %3290 = vmatmul.msk.f32.gmra.mxu2 %vm559_vm1, %v2815_v0  ;;  %v3379_v0 = vld [vmem:[%s3464_s10 + $0xd8] sm:$0xff] }
 0x41e   : > { %v2783_v13 = vpop.f32.mrf.mxu3 }
 0x41f   : > { %v2784_v10 = vadd.f32 %v4989_v26, %v2783_v13 }
 0x421   : > { %v2823_v33 = vmax.f32 %v2784_v10, 0.0  ;;  %v2762_v56 = vpop.f32.mrf.mxu1  ;;  %v3380_v10 = vld [vmem:[%s3464_s10 + $0xa0] sm:$0xff] }
 0x422   : > { %v2763_v2 = vadd.f32 %v4989_v26, %v2762_v56 }
 0x423   : > { %3298 = vmatmul.msk.f32.gmra.mxu3 %vm559_vm1, %v2823_v33 }
 0x424   : > { %v2816_v43 = vmax.f32 %v2763_v2, 0.0  ;;  %v2993_v35 = vpop.f32.mrf.mxu2 }
 0x425   : > { %v2994_v5 = vadd.f32 %v4749_v3, %v2993_v35 }
 0x426   : > { %3291 = vmatmul.msk.f32.gmra.mxu2 %vm559_vm1, %v2816_v43 }
 0x427   : > { %v3059_v37 = vadd.f32 %v3372_v58, %v2994_v5  ;;  %v3381_v5 = vld [vmem:[%s3464_s10 + $0xe0] sm:$0xff] }
 0x429   : > { %v3091_v49 = vmax.f32 %v3059_v37, 0.0 }
 0x42b   : > { %3123 = vst.msk [vmem:[%s4768_s19 + $0x78] sm:$0xff] %vm317_vm0, %v3091_v49 }
 0x435   : > { %v2996_v7 = vpop.f32.mrf.mxu2 }
 0x436   : > { %v2997_v22 = vadd.f32 %v4749_v3, %v2996_v7 }
 0x437   : > { %v2786_v44 = vpop.f32.mrf.mxu3 }
 0x438   : > { %v3060_v4 = vadd.f32 %v3373_v18, %v2997_v22  ;;  %v2787_v24 = vadd.f32 %v4989_v26, %v2786_v44  ;;  %v3382_v22 = vld [vmem:[%s3464_s10 + $0xa8] sm:$0xff] }
 0x43a   : > { %v3092_v6 = vmax.f32 %v3060_v4, 0.0  ;;  %v2824_v28 = vmax.f32 %v2787_v24, 0.0 }
 0x43c   : > { %3124 = vst.msk [vmem:[%s4768_s19 + $0x80] sm:$0xff] %vm317_vm0, %v3092_v6  ;;  %3299 = vmatmul.msk.f32.gmra.mxu3 %vm559_vm1, %v2824_v28  ;;  %v3383_v6 = vld [vmem:[%s3464_s10 + $0xe8] sm:$0xff] }
 0x448   : > { %v2789_v39 = vpop.f32.mrf.mxu3  ;;  %v2765_v50 = vpop.f32.mrf.mxu1 }
 0x449   : > { %v2790_v11 = vadd.f32 %v4989_v26, %v2789_v39  ;;  %v2766_v60 = vadd.f32 %v4989_v26, %v2765_v50 }
 0x44b   : > { %v2825_v42 = vmax.f32 %v2790_v11, 0.0  ;;  %v2817_v1 = vmax.f32 %v2766_v60, 0.0 }
 0x44d   : > { %3300 = vmatmul.msk.f32.gmra.mxu3 %vm559_vm1, %v2825_v42  ;;  %3292 = vmatmul.msk.f32.gmra.mxu2 %vm559_vm1, %v2817_v1  ;;  %v3384_v1 = vld [vmem:[%s3464_s10 + $0xf0] sm:$0xff] }
 0x458   : > { %v2999_v20 = vpop.f32.mrf.mxu2 }
 0x459   : > { %v3000_v52 = vadd.f32 %v4749_v3, %v2999_v20 }
 0x45b   : > { %v3061_v57 = vadd.f32 %v3374_v9, %v3000_v52  ;;  %v3385_v52 = vld [vmem:[%s3464_s10 + $0xb0] sm:$0xff] }
 0x45d   : > { %v3093_v51 = vmax.f32 %v3061_v57, 0.0 }
 0x45f   : > { %3125 = vst.msk [vmem:[%s4768_s19 + $0x88] sm:$0xff] %vm317_vm0, %v3093_v51 }
 0x461   : > { %v2768_v36 = vpop.f32.mrf.mxu1 }
 0x462   : > { %v2769_v12 = vadd.f32 %v4989_v26, %v2768_v36 }
 0x464   : > { %v2818_v61 = vmax.f32 %v2769_v12, 0.0 }
 0x466   : > { %3293 = vmatmul.msk.f32.gmra.mxu2 %vm559_vm1, %v2818_v61  ;;  %v3386_v61 = vld [vmem:[%s3464_s10 + $0xb8] sm:$0xff] }
 0x46e   : > { %3294 = vmatmul.msk.f32.gmra.mxu2 %vm559_vm1, %v2819_v19 }
 0x473   : > { %v2792_v8 = vpop.f32.mrf.mxu3 }
 0x474   : > { %v2793_v27 = vadd.f32 %v4989_v26, %v2792_v8 }
 0x475   : > { %v3002_v15 = vpop.f32.mrf.mxu2 }
 0x476   : > { %v2826_v32 = vmax.f32 %v2793_v27, 0.0  ;;  %v3003_v38 = vadd.f32 %v4749_v3, %v3002_v15  ;;  %v3387_v15 = vld [vmem:[%s3464_s10 + $0xc0] sm:$0xff] }
 0x478   : > { %v3062_v30 = vadd.f32 %v3375_v40, %v3003_v38  ;;  %3301 = vmatmul.msk.f32.gmra.mxu3 %vm559_vm1, %v2826_v32 }
 0x47a   : > { %v3094_v54 = vmax.f32 %v3062_v30, 0.0 }
 0x47b   : > { %v3023_v29 = vpop.f32.mrf.mxu3 }
 0x47c   : > { %3126 = vst.msk [vmem:[%s4768_s19 + $0x90] sm:$0xff] %vm317_vm0, %v3094_v54  ;;  %v3024_v53 = vadd.f32 %v4749_v3, %v3023_v29  ;;  %v3388_v54 = vld [vmem:[%s3464_s10 + $0xf8] sm:$0xff] }
 0x47e   : > { %v3069_v26 = vadd.f32 %v3376_v41, %v3024_v53 }
 0x480   : > { %v3101_v47 = vmax.f32 %v3069_v26, 0.0 }
 0x482   : > { %3133 = vst.msk [vmem:[%s4768_s19 + $0xc8] sm:$0xff] %vm317_vm0, %v3101_v47 }
 0x489   : > { %v3005_v25 = vpop.f32.mrf.mxu2 }
 0x48a   : > { %v3006_v16 = vadd.f32 %v4749_v3, %v3005_v25 }
 0x48c   : > { %v3063_v21 = vadd.f32 %v3377_v48, %v3006_v16 }
 0x48e   : > { %v3095_v62 = vmax.f32 %v3063_v21, 0.0 }
 0x490   : > { %3127 = vst.msk [vmem:[%s4768_s19 + $0x98] sm:$0xff] %vm317_vm0, %v3095_v62 }
 0x492   : > { %v3026_v46 = vpop.f32.mrf.mxu3 }
 0x493   : > { %v3027_v23 = vadd.f32 %v4749_v3, %v3026_v46 }
 0x495   : > { %v3070_v55 = vadd.f32 %v3378_v31, %v3027_v23 }
 0x497   : > { %v3102_v34 = vmax.f32 %v3070_v55, 0.0 }
 0x499   : > { %3134 = vst.msk [vmem:[%s4768_s19 + $0xd0] sm:$0xff] %vm317_vm0, %v3102_v34 }
 0x49b   : > { %v3029_v14 = vpop.f32.mrf.mxu3 }
 0x49c   : > { %v3030_v59 = vadd.f32 %v4749_v3, %v3029_v14  ;;  %v3008_v45 = vpop.f32.mrf.mxu2 }
 0x49d   : > { %v3009_v63 = vadd.f32 %v4749_v3, %v3008_v45 }
 0x49e   : > { %v3071_v13 = vadd.f32 %v3379_v0, %v3030_v59 }
 0x49f   : > { %v3064_v33 = vadd.f32 %v3380_v10, %v3009_v63 }
 0x4a0   : > { %v3103_v56 = vmax.f32 %v3071_v13, 0.0 }
 0x4a1   : > { %v3096_v2 = vmax.f32 %v3064_v33, 0.0 }
 0x4a2   : > { %3135 = vst.msk [vmem:[%s4768_s19 + $0xd8] sm:$0xff] %vm317_vm0, %v3103_v56 }
 0x4a3   : > { %3128 = vst.msk [vmem:[%s4768_s19 + $0xa0] sm:$0xff] %vm317_vm0, %v3096_v2 }
 0x4a6   : > { %v3032_v43 = vpop.f32.mrf.mxu3 }
 0x4a7   : > { %v3033_v35 = vadd.f32 %v4749_v3, %v3032_v43 }
 0x4a9   : > { %v3072_v58 = vadd.f32 %v3381_v5, %v3033_v35  ;;  %v3011_v37 = vpop.f32.mrf.mxu2 }
 0x4aa   : > { %v3012_v49 = vadd.f32 %v4749_v3, %v3011_v37 }
 0x4ab   : > { %v3104_v7 = vmax.f32 %v3072_v58, 0.0 }
 0x4ac   : > { %v3065_v44 = vadd.f32 %v3382_v22, %v3012_v49 }
 0x4ad   : > { %3136 = vst.msk [vmem:[%s4768_s19 + $0xe0] sm:$0xff] %vm317_vm0, %v3104_v7 }
 0x4ae   : > { %v3097_v18 = vmax.f32 %v3065_v44, 0.0 }
 0x4b0   : > { %3129 = vst.msk [vmem:[%s4768_s19 + $0xa8] sm:$0xff] %vm317_vm0, %v3097_v18 }
 0x4bf   : > { %v3035_v4 = vpop.f32.mrf.mxu3 }
 0x4c0   : > { %v3036_v24 = vadd.f32 %v4749_v3, %v3035_v4 }
 0x4c2   : > { %v3073_v28 = vadd.f32 %v3383_v6, %v3036_v24 }
 0x4c4   : > { %v3105_v39 = vmax.f32 %v3073_v28, 0.0 }
 0x4c6   : > { %3137 = vst.msk [vmem:[%s4768_s19 + $0xe8] sm:$0xff] %vm317_vm0, %v3105_v39 }
 0x4d0   : > { %v3038_v50 = vpop.f32.mrf.mxu3  ;;  %v3014_v11 = vpop.f32.mrf.mxu2 }
 0x4d1   : > { %v3039_v60 = vadd.f32 %v4749_v3, %v3038_v50  ;;  %v3015_v42 = vadd.f32 %v4749_v3, %v3014_v11 }
 0x4d3   : > { %v3074_v20 = vadd.f32 %v3384_v1, %v3039_v60  ;;  %v3066_v9 = vadd.f32 %v3385_v52, %v3015_v42 }
 0x4d5   : > { %v3106_v57 = vmax.f32 %v3074_v20, 0.0  ;;  %v3098_v51 = vmax.f32 %v3066_v9, 0.0 }
 0x4d7   : > { %3138 = vst.msk [vmem:[%s4768_s19 + $0xf0] sm:$0xff] %vm317_vm0, %v3106_v57 }
 0x4d8   : > { %3130 = vst.msk [vmem:[%s4768_s19 + $0xb0] sm:$0xff] %vm317_vm0, %v3098_v51 }
 0x4e9   : > { %v3017_v36 = vpop.f32.mrf.mxu2 }
 0x4ea   : > { %v3018_v12 = vadd.f32 %v4749_v3, %v3017_v36 }
 0x4ec   : > { %v3067_v17 = vadd.f32 %v3386_v61, %v3018_v12 }
 0x4ee   : > { %v3099_v19 = vmax.f32 %v3067_v17, 0.0 }
 0x4f0   : > { %3131 = vst.msk [vmem:[%s4768_s19 + $0xb8] sm:$0xff] %vm317_vm0, %v3099_v19 }
 0x4f1   : > { %v3020_v8 = vpop.f32.mrf.mxu2 }
 0x4f2   : > { %v3021_v27 = vadd.f32 %v4749_v3, %v3020_v8 }
 0x4f4   : > { %v3068_v32 = vadd.f32 %v3387_v15, %v3021_v27 }
 0x4f6   : > { %v3100_v38 = vmax.f32 %v3068_v32, 0.0 }
 0x4f8   : > { %3132 = vst.msk [vmem:[%s4768_s19 + $0xc0] sm:$0xff] %vm317_vm0, %v3100_v38 }
 0x4fb   : > { %v3041_v40 = vpop.f32.mrf.mxu3 }
 0x4fc   : > { %v3042_v30 = vadd.f32 %v4749_v3, %v3041_v40 }
 0x4fe   : > { %v3075_v29 = vadd.f32 %v3388_v54, %v3042_v30 }
 0x500   : > { %v3107_v53 = vmax.f32 %v3075_v29, 0.0 }
 0x502   : > { %3139 = vst.msk [vmem:[%s4768_s19 + $0xf8] sm:$0xff] %vm317_vm0, %v3107_v53 }
 0x503 PF: > { %s17_s24 = sadd.s32 1, %s3395_s24  }
 0x504   : > { %p14_p4 = scmp.ge.s32.totalorder %s17_s24, 4  }
 0x506   :  { %16 = sbr.rel (!%p14_p4) target bundleno = 1 (0x1), region = 78 }

</bundles_post_ra>
